<compile_context>
chip_gen: v6e
topology: v6e:2x2x1
jax: 0.10.0
libtpu: 0.0.40
codegen_flags: <defaults>
</compile_context>

<pallas_src>
import functools

import jax
import jax.numpy as jnp
from jax import lax
from jax.experimental import pallas as pl
from jax.experimental.pallas import tpu as pltpu


def _round_up(x, m):
    return (x + m - 1) // m * m


def _cornn_kernel(inp_ref, wh_t_ref, hy_out_ref, state_s,
                  *, dt, gamma, epsilon, n_hid, t_chunk, t_total):
    """One grid step = `t_chunk` recurrence steps for one batch tile.

    inp_ref    : (t_chunk, TB, n_hid) f32   precomputed i2h activations
    wh_t_ref   : (2*n_hid, n_hid)           resident h2h weight, [Wz | Wy]^T
    hy_out_ref : (TB, n_hid)                output block (resident over time)
    state_s    : (TB, 2*n_hid) f32 scratch  carry, laid out as [hz | hy]
    """
    tc = pl.program_id(1)
    H = n_hid

    @pl.when(tc == 0)
    def _init():
        state_s[...] = jnp.zeros_like(state_s)

    w_dtype = wh_t_ref.dtype
    needs_mask = (t_total % t_chunk) != 0  # padded tail steps in last chunk

    def step(i, carry):
        state = state_s[...]                        # (TB, 2H) f32
        hz = state[:, :H]
        hy = state[:, H:]
        # Single merged h2h matmul: [hz | hy] @ [Wz | Wy]^T  (f32 accumulate).
        pre = jnp.dot(state.astype(w_dtype), wh_t_ref[...],
                      preferred_element_type=jnp.float32)
        pre = pre + inp_ref[i]
        hz_new = hz + dt * (jnp.tanh(pre) - gamma * hy - epsilon * hz)
        hy_new = hy + dt * hz_new
        if needs_mask:
            valid = (tc * t_chunk + i) < t_total
            hz_new = jnp.where(valid, hz_new, hz)
            hy_new = jnp.where(valid, hy_new, hy)
        state_s[:, :H] = hz_new
        state_s[:, H:] = hy_new
        return carry

    lax.fori_loop(0, t_chunk, step, 0, unroll=True)

    @pl.when(tc == pl.num_programs(1) - 1)
    def _finalize():
        hy_out_ref[...] = state_s[:, H:].astype(hy_out_ref.dtype)


def cornn_forward(x, wi, bi, wh, *, dt, gamma, epsilon,
                  weight_dtype=jnp.bfloat16, t_chunk=16, b_tile=None):
    """x: (T, B, n_inp); wi: (n_hid, n_inp); bi: (n_hid,); wh: (n_hid, 2*n_hid)."""
    T, B, n_inp = x.shape
    n_hid = wi.shape[0]

    if T == 0:  # guard: output would otherwise never be initialized
        return jnp.zeros((B, n_hid), jnp.float32)

    # ---- i2h hoisted out of the recurrence: one big batched matmul in XLA.
    inp = jnp.einsum("tbi,hi->tbh", x.astype(jnp.float32),
                     wi.astype(jnp.float32)) + bi.astype(jnp.float32)

    # ---- Pad batch to a sublane-friendly tile, time to whole chunks
    #      (extra steps are masked inside the kernel).
    if b_tile is None:
        b_tile = min(_round_up(B, 8), 128)
    B_pad = _round_up(B, b_tile)
    t_chunk = min(t_chunk, max(T, 1))
    T_pad = _round_up(T, t_chunk)
    inp = jnp.pad(inp, ((0, T_pad - T), (0, B_pad - B), (0, 0)))

    # ---- Merged, pre-transposed h2h weight (MXU-native dtype).
    wh_t = wh.T.astype(weight_dtype)            # (2*n_hid, n_hid), [Wz | Wy]^T

    num_b = B_pad // b_tile
    num_t = T_pad // t_chunk

    kernel = functools.partial(
        _cornn_kernel, dt=dt, gamma=gamma, epsilon=epsilon,
        n_hid=n_hid, t_chunk=t_chunk, t_total=T)

    hy = pl.pallas_call(
        kernel,
        out_shape=jax.ShapeDtypeStruct((B_pad, n_hid), jnp.float32),
        grid_spec=pltpu.PrefetchScalarGridSpec(
            num_scalar_prefetch=0,
            grid=(num_b, num_t),                            # (parallel B, serial T)
            in_specs=[
                pl.BlockSpec((t_chunk, b_tile, n_hid),
                             lambda b, t: (t, b, 0)),        # inp chunk
                pl.BlockSpec((2 * n_hid, n_hid),
                             lambda b, t: (0, 0)),           # resident Wh^T
            ],
            out_specs=pl.BlockSpec((b_tile, n_hid),
                                   lambda b, t: (b, 0)),     # hy (resident)
            scratch_shapes=[
                pltpu.VMEM((b_tile, 2 * n_hid), jnp.float32),  # [hz | hy] carry
            ],
        ),
        compiler_params=pltpu.CompilerParams(
            dimension_semantics=("parallel", "arbitrary"),
            vmem_limit_bytes=32 * 1024 * 1024,
        ),
    )(inp, wh_t)

    return hy[:B]


def cornn_reference(x, wi, bi, wh, *, dt, gamma, epsilon):
    """Pure-JAX reference mirroring the PyTorch forward."""
    T, B, _ = x.shape
    n_hid = wi.shape[0]
    inputs = jnp.einsum("tbi,hi->tbh", x, wi) + bi

    def step(carry, inp_t):
        hy, hz = carry
        cat = jnp.concatenate([hz, hy], axis=1)
        hz = hz + dt * (jnp.tanh(cat @ wh.T + inp_t) - gamma * hy - epsilon * hz)
        hy = hy + dt * hz
        return (hy, hz), None

    (hy, _), _ = jax.lax.scan(
        step, (jnp.zeros((B, n_hid)), jnp.zeros((B, n_hid))), inputs)
    return hy


if __name__ == "__main__":
    # Small, deterministic setup consistent with the module's forward.
    # n_hid=128 as in the spec; T not a multiple of the time chunk and B not a
    # multiple of 8 so the padding/masking paths are exercised.
    T, B, n_inp, n_hid = 50, 6, 64, 128
    dt, gamma, epsilon = 5.4e-2, 4.9, 4.8

    key = jax.random.PRNGKey(0)
    kx, kwi, kbi, kwh = jax.random.split(key, 4)

    x = jax.random.normal(kx, (T, B, n_inp), dtype=jnp.float32)
    # nn.Linear-style uniform init (deterministic via PRNGKey(0) splits).
    wi = jax.random.uniform(kwi, (n_hid, n_inp), jnp.float32,
                            -1.0 / jnp.sqrt(n_inp), 1.0 / jnp.sqrt(n_inp))
    bi = jax.random.uniform(kbi, (n_hid,), jnp.float32,
                            -1.0 / jnp.sqrt(n_inp), 1.0 / jnp.sqrt(n_inp))
    wh = jax.random.uniform(kwh, (n_hid, 2 * n_hid), jnp.float32,
                            -1.0 / jnp.sqrt(2 * n_hid), 1.0 / jnp.sqrt(2 * n_hid))

    hy_ref = cornn_reference(x, wi, bi, wh, dt=dt, gamma=gamma, epsilon=epsilon)

    # f32 resident weight: tight check against the pure-JAX reference.
    hy_f32 = cornn_forward(x, wi, bi, wh, dt=dt, gamma=gamma, epsilon=epsilon,
                           weight_dtype=jnp.float32)
    hy_f32 = jax.block_until_ready(hy_f32)
    assert hy_f32.shape == (B, n_hid)
    assert jnp.allclose(hy_f32, hy_ref, atol=1e-4, rtol=1e-4), "f32 mismatch"

    # bf16 resident weight (default, MXU-native): looser numerical check.
    hy_bf16 = cornn_forward(x, wi, bi, wh, dt=dt, gamma=gamma, epsilon=epsilon)
    hy_bf16 = jax.block_until_ready(hy_bf16)
    assert hy_bf16.shape == (B, n_hid)
    assert jnp.allclose(hy_bf16, hy_ref, atol=5e-2, rtol=5e-2), "bf16 mismatch"

    print("KERNEL_OK")
</pallas_src>

<mosaic_0001>
module attributes {stable_mosaic.version = 11 : i64} {
  func.func @_cornn_kernel(%arg0: i32, %arg1: i32, %arg2: memref<16x8x128xf32, #tpu.memory_space<vmem>>, %arg3: memref<256x128xf32, #tpu.memory_space<vmem>>, %arg4: memref<8x128xf32, #tpu.memory_space<vmem>>, %arg5: memref<8x256xf32, #tpu.memory_space<vmem>>) attributes {dimension_semantics = [#tpu.dimension_semantics<parallel>, #tpu.dimension_semantics<arbitrary>], iteration_bounds = array<i64: 1, 4>, scalar_prefetch = 0 : i64, scratch_operands = 1 : i64, tpu.core_type = #tpu.core_type<tc>, window_params = [{transform_indices = @transform_0, window_bounds = array<i64: 16, 8, 128>}, {pipeline_mode = #tpu.pipeline_mode<synchronous>, transform_indices = @transform_1, window_bounds = array<i64: 256, 128>}, {transform_indices = @transform_2, window_bounds = array<i64: 8, 128>}]} {
    %c0_i32 = arith.constant 0 : i32
    %0 = arith.cmpi eq, %arg1, %c0_i32 : i32
    %1 = arith.extui %0 : i1 to i32
    %c0_i32_0 = arith.constant 0 : i32
    %2 = arith.cmpi ne, %1, %c0_i32_0 : i32
    scf.if %2 {
      %cst_272 = arith.constant 0.000000e+00 : f32
      %470 = vector.broadcast %cst_272 : f32 to vector<8x256xf32>
      %c0_273 = arith.constant 0 : index
      %c0_274 = arith.constant 0 : index
      %471 = vector.load %arg5[%c0_273, %c0_274] : memref<8x256xf32, #tpu.memory_space<vmem>>, vector<8x256xf32>
      tpu.vector_store %arg5[%c0_273, %c0_274], %470 {strides = array<i32>} : memref<8x256xf32, #tpu.memory_space<vmem>>, vector<8x256xf32>,
    } else {
    }
    %c0_i32_1 = arith.constant 0 : i32
    %c0 = arith.constant 0 : index
    %c0_2 = arith.constant 0 : index
    %3 = vector.load %arg5[%c0, %c0_2] : memref<8x256xf32, #tpu.memory_space<vmem>>, vector<8x256xf32>
    %4 = vector.extract_strided_slice %3 {offsets = [0, 0], sizes = [8, 128], strides = [1, 1]} : vector<8x256xf32> to vector<8x128xf32>
    %5 = vector.extract_strided_slice %3 {offsets = [0, 128], sizes = [8, 128], strides = [1, 1]} : vector<8x256xf32> to vector<8x128xf32>
    %c0_3 = arith.constant 0 : index
    %c0_4 = arith.constant 0 : index
    %6 = vector.load %arg3[%c0_3, %c0_4] : memref<256x128xf32, #tpu.memory_space<vmem>>, vector<256x128xf32>
    %cst = arith.constant dense<0.000000e+00> : vector<8x128xf32>
    %7 = tpu.matmul %3, %6, %cst {dimension_numbers = #tpu.dot_dimension_numbers<[1], [0], [0], [1], [0, 0, 1, 1], [], []>} : vector<8x256xf32>, vector<256x128xf32>, vector<8x128xf32> -> vector<8x128xf32>
    %8 = arith.index_cast %c0_i32_1 : i32 to index
    %c0_5 = arith.constant 0 : index
    %c0_6 = arith.constant 0 : index
    %9 = vector.load %arg2[%8, %c0_5, %c0_6] : memref<16x8x128xf32, #tpu.memory_space<vmem>>, vector<1x8x128xf32>
    %10 = vector.shape_cast %9 : vector<1x8x128xf32> to vector<8x128xf32>
    %11 = arith.addf %7, %10 : vector<8x128xf32>
    %12 = math.tanh %11 : vector<8x128xf32>
    %cst_7 = arith.constant 4.900000e+00 : f32
    %13 = vector.broadcast %cst_7 : f32 to vector<8x128xf32>
    %14 = arith.mulf %13, %5 : vector<8x128xf32>
    %15 = arith.subf %12, %14 : vector<8x128xf32>
    %cst_8 = arith.constant 4.800000e+00 : f32
    %16 = vector.broadcast %cst_8 : f32 to vector<8x128xf32>
    %17 = arith.mulf %16, %4 : vector<8x128xf32>
    %18 = arith.subf %15, %17 : vector<8x128xf32>
    %cst_9 = arith.constant 5.400000e-02 : f32
    %19 = vector.broadcast %cst_9 : f32 to vector<8x128xf32>
    %20 = arith.mulf %19, %18 : vector<8x128xf32>
    %21 = arith.addf %4, %20 : vector<8x128xf32>
    %cst_10 = arith.constant 5.400000e-02 : f32
    %22 = vector.broadcast %cst_10 : f32 to vector<8x128xf32>
    %23 = arith.mulf %22, %21 : vector<8x128xf32>
    %24 = arith.addf %5, %23 : vector<8x128xf32>
    %c16_i32 = arith.constant 16 : i32
    %25 = arith.muli %arg1, %c16_i32 : i32
    %26 = arith.addi %25, %c0_i32_1 : i32
    %c50_i32 = arith.constant 50 : i32
    %27 = arith.cmpi slt, %26, %c50_i32 : i32
    %28 = arith.select %27, %21, %4 : vector<8x128xf32>
    %29 = arith.select %27, %24, %5 : vector<8x128xf32>
    %c0_11 = arith.constant 0 : index
    %c0_12 = arith.constant 0 : index
    %30 = vector.load %arg5[%c0_11, %c0_12] : memref<8x256xf32, #tpu.memory_space<vmem>>, vector<8x128xf32>
    tpu.vector_store %arg5[%c0_11, %c0_12], %28 {strides = array<i32>} : memref<8x256xf32, #tpu.memory_space<vmem>>, vector<8x128xf32>,
    %c0_13 = arith.constant 0 : index
    %c128 = arith.constant 128 : index
    %31 = vector.load %arg5[%c0_13, %c128] : memref<8x256xf32, #tpu.memory_space<vmem>>, vector<8x128xf32>
    tpu.vector_store %arg5[%c0_13, %c128], %29 {strides = array<i32>} : memref<8x256xf32, #tpu.memory_space<vmem>>, vector<8x128xf32>,
    %c1_i32 = arith.constant 1 : i32
    %c0_14 = arith.constant 0 : index
    %c0_15 = arith.constant 0 : index
    %32 = vector.load %arg5[%c0_14, %c0_15] : memref<8x256xf32, #tpu.memory_space<vmem>>, vector<8x256xf32>
    %33 = vector.extract_strided_slice %32 {offsets = [0, 0], sizes = [8, 128], strides = [1, 1]} : vector<8x256xf32> to vector<8x128xf32>
    %34 = vector.extract_strided_slice %32 {offsets = [0, 128], sizes = [8, 128], strides = [1, 1]} : vector<8x256xf32> to vector<8x128xf32>
    %c0_16 = arith.constant 0 : index
    %c0_17 = arith.constant 0 : index
    %35 = vector.load %arg3[%c0_16, %c0_17] : memref<256x128xf32, #tpu.memory_space<vmem>>, vector<256x128xf32>
    %cst_18 = arith.constant dense<0.000000e+00> : vector<8x128xf32>
    %36 = tpu.matmul %32, %35, %cst_18 {dimension_numbers = #tpu.dot_dimension_numbers<[1], [0], [0], [1], [0, 0, 1, 1], [], []>} : vector<8x256xf32>, vector<256x128xf32>, vector<8x128xf32> -> vector<8x128xf32>
    %37 = arith.index_cast %c1_i32 : i32 to index
    %c0_19 = arith.constant 0 : index
    %c0_20 = arith.constant 0 : index
    %38 = vector.load %arg2[%37, %c0_19, %c0_20] : memref<16x8x128xf32, #tpu.memory_space<vmem>>, vector<1x8x128xf32>
    %39 = vector.shape_cast %38 : vector<1x8x128xf32> to vector<8x128xf32>
    %40 = arith.addf %36, %39 : vector<8x128xf32>
    %41 = math.tanh %40 : vector<8x128xf32>
    %cst_21 = arith.constant 4.900000e+00 : f32
    %42 = vector.broadcast %cst_21 : f32 to vector<8x128xf32>
    %43 = arith.mulf %42, %34 : vector<8x128xf32>
    %44 = arith.subf %41, %43 : vector<8x128xf32>
    %cst_22 = arith.constant 4.800000e+00 : f32
    %45 = vector.broadcast %cst_22 : f32 to vector<8x128xf32>
    %46 = arith.mulf %45, %33 : vector<8x128xf32>
    %47 = arith.subf %44, %46 : vector<8x128xf32>
    %cst_23 = arith.constant 5.400000e-02 : f32
    %48 = vector.broadcast %cst_23 : f32 to vector<8x128xf32>
    %49 = arith.mulf %48, %47 : vector<8x128xf32>
    %50 = arith.addf %33, %49 : vector<8x128xf32>
    %cst_24 = arith.constant 5.400000e-02 : f32
    %51 = vector.broadcast %cst_24 : f32 to vector<8x128xf32>
    %52 = arith.mulf %51, %50 : vector<8x128xf32>
    %53 = arith.addf %34, %52 : vector<8x128xf32>
    %c16_i32_25 = arith.constant 16 : i32
    %54 = arith.muli %arg1, %c16_i32_25 : i32
    %55 = arith.addi %54, %c1_i32 : i32
    %c50_i32_26 = arith.constant 50 : i32
    %56 = arith.cmpi slt, %55, %c50_i32_26 : i32
    %57 = arith.select %56, %50, %33 : vector<8x128xf32>
    %58 = arith.select %56, %53, %34 : vector<8x128xf32>
    %c0_27 = arith.constant 0 : index
    %c0_28 = arith.constant 0 : index
    %59 = vector.load %arg5[%c0_27, %c0_28] : memref<8x256xf32, #tpu.memory_space<vmem>>, vector<8x128xf32>
    tpu.vector_store %arg5[%c0_27, %c0_28], %57 {strides = array<i32>} : memref<8x256xf32, #tpu.memory_space<vmem>>, vector<8x128xf32>,
    %c0_29 = arith.constant 0 : index
    %c128_30 = arith.constant 128 : index
    %60 = vector.load %arg5[%c0_29, %c128_30] : memref<8x256xf32, #tpu.memory_space<vmem>>, vector<8x128xf32>
    tpu.vector_store %arg5[%c0_29, %c128_30], %58 {strides = array<i32>} : memref<8x256xf32, #tpu.memory_space<vmem>>, vector<8x128xf32>,
    %c2_i32 = arith.constant 2 : i32
    %c0_31 = arith.constant 0 : index
    %c0_32 = arith.constant 0 : index
    %61 = vector.load %arg5[%c0_31, %c0_32] : memref<8x256xf32, #tpu.memory_space<vmem>>, vector<8x256xf32>
    %62 = vector.extract_strided_slice %61 {offsets = [0, 0], sizes = [8, 128], strides = [1, 1]} : vector<8x256xf32> to vector<8x128xf32>
    %63 = vector.extract_strided_slice %61 {offsets = [0, 128], sizes = [8, 128], strides = [1, 1]} : vector<8x256xf32> to vector<8x128xf32>
    %c0_33 = arith.constant 0 : index
    %c0_34 = arith.constant 0 : index
    %64 = vector.load %arg3[%c0_33, %c0_34] : memref<256x128xf32, #tpu.memory_space<vmem>>, vector<256x128xf32>
    %cst_35 = arith.constant dense<0.000000e+00> : vector<8x128xf32>
    %65 = tpu.matmul %61, %64, %cst_35 {dimension_numbers = #tpu.dot_dimension_numbers<[1], [0], [0], [1], [0, 0, 1, 1], [], []>} : vector<8x256xf32>, vector<256x128xf32>, vector<8x128xf32> -> vector<8x128xf32>
    %66 = arith.index_cast %c2_i32 : i32 to index
    %c0_36 = arith.constant 0 : index
    %c0_37 = arith.constant 0 : index
    %67 = vector.load %arg2[%66, %c0_36, %c0_37] : memref<16x8x128xf32, #tpu.memory_space<vmem>>, vector<1x8x128xf32>
    %68 = vector.shape_cast %67 : vector<1x8x128xf32> to vector<8x128xf32>
    %69 = arith.addf %65, %68 : vector<8x128xf32>
    %70 = math.tanh %69 : vector<8x128xf32>
    %cst_38 = arith.constant 4.900000e+00 : f32
    %71 = vector.broadcast %cst_38 : f32 to vector<8x128xf32>
    %72 = arith.mulf %71, %63 : vector<8x128xf32>
    %73 = arith.subf %70, %72 : vector<8x128xf32>
    %cst_39 = arith.constant 4.800000e+00 : f32
    %74 = vector.broadcast %cst_39 : f32 to vector<8x128xf32>
    %75 = arith.mulf %74, %62 : vector<8x128xf32>
    %76 = arith.subf %73, %75 : vector<8x128xf32>
    %cst_40 = arith.constant 5.400000e-02 : f32
    %77 = vector.broadcast %cst_40 : f32 to vector<8x128xf32>
    %78 = arith.mulf %77, %76 : vector<8x128xf32>
    %79 = arith.addf %62, %78 : vector<8x128xf32>
    %cst_41 = arith.constant 5.400000e-02 : f32
    %80 = vector.broadcast %cst_41 : f32 to vector<8x128xf32>
    %81 = arith.mulf %80, %79 : vector<8x128xf32>
    %82 = arith.addf %63, %81 : vector<8x128xf32>
    %c16_i32_42 = arith.constant 16 : i32
    %83 = arith.muli %arg1, %c16_i32_42 : i32
    %84 = arith.addi %83, %c2_i32 : i32
    %c50_i32_43 = arith.constant 50 : i32
    %85 = arith.cmpi slt, %84, %c50_i32_43 : i32
    %86 = arith.select %85, %79, %62 : vector<8x128xf32>
    %87 = arith.select %85, %82, %63 : vector<8x128xf32>
    %c0_44 = arith.constant 0 : index
    %c0_45 = arith.constant 0 : index
    %88 = vector.load %arg5[%c0_44, %c0_45] : memref<8x256xf32, #tpu.memory_space<vmem>>, vector<8x128xf32>
    tpu.vector_store %arg5[%c0_44, %c0_45], %86 {strides = array<i32>} : memref<8x256xf32, #tpu.memory_space<vmem>>, vector<8x128xf32>,
    %c0_46 = arith.constant 0 : index
    %c128_47 = arith.constant 128 : index
    %89 = vector.load %arg5[%c0_46, %c128_47] : memref<8x256xf32, #tpu.memory_space<vmem>>, vector<8x128xf32>
    tpu.vector_store %arg5[%c0_46, %c128_47], %87 {strides = array<i32>} : memref<8x256xf32, #tpu.memory_space<vmem>>, vector<8x128xf32>,
    %c3_i32 = arith.constant 3 : i32
    %c0_48 = arith.constant 0 : index
    %c0_49 = arith.constant 0 : index
    %90 = vector.load %arg5[%c0_48, %c0_49] : memref<8x256xf32, #tpu.memory_space<vmem>>, vector<8x256xf32>
    %91 = vector.extract_strided_slice %90 {offsets = [0, 0], sizes = [8, 128], strides = [1, 1]} : vector<8x256xf32> to vector<8x128xf32>
    %92 = vector.extract_strided_slice %90 {offsets = [0, 128], sizes = [8, 128], strides = [1, 1]} : vector<8x256xf32> to vector<8x128xf32>
    %c0_50 = arith.constant 0 : index
    %c0_51 = arith.constant 0 : index
    %93 = vector.load %arg3[%c0_50, %c0_51] : memref<256x128xf32, #tpu.memory_space<vmem>>, vector<256x128xf32>
    %cst_52 = arith.constant dense<0.000000e+00> : vector<8x128xf32>
    %94 = tpu.matmul %90, %93, %cst_52 {dimension_numbers = #tpu.dot_dimension_numbers<[1], [0], [0], [1], [0, 0, 1, 1], [], []>} : vector<8x256xf32>, vector<256x128xf32>, vector<8x128xf32> -> vector<8x128xf32>
    %95 = arith.index_cast %c3_i32 : i32 to index
    %c0_53 = arith.constant 0 : index
    %c0_54 = arith.constant 0 : index
    %96 = vector.load %arg2[%95, %c0_53, %c0_54] : memref<16x8x128xf32, #tpu.memory_space<vmem>>, vector<1x8x128xf32>
    %97 = vector.shape_cast %96 : vector<1x8x128xf32> to vector<8x128xf32>
    %98 = arith.addf %94, %97 : vector<8x128xf32>
    %99 = math.tanh %98 : vector<8x128xf32>
    %cst_55 = arith.constant 4.900000e+00 : f32
    %100 = vector.broadcast %cst_55 : f32 to vector<8x128xf32>
    %101 = arith.mulf %100, %92 : vector<8x128xf32>
    %102 = arith.subf %99, %101 : vector<8x128xf32>
    %cst_56 = arith.constant 4.800000e+00 : f32
    %103 = vector.broadcast %cst_56 : f32 to vector<8x128xf32>
    %104 = arith.mulf %103, %91 : vector<8x128xf32>
    %105 = arith.subf %102, %104 : vector<8x128xf32>
    %cst_57 = arith.constant 5.400000e-02 : f32
    %106 = vector.broadcast %cst_57 : f32 to vector<8x128xf32>
    %107 = arith.mulf %106, %105 : vector<8x128xf32>
    %108 = arith.addf %91, %107 : vector<8x128xf32>
    %cst_58 = arith.constant 5.400000e-02 : f32
    %109 = vector.broadcast %cst_58 : f32 to vector<8x128xf32>
    %110 = arith.mulf %109, %108 : vector<8x128xf32>
    %111 = arith.addf %92, %110 : vector<8x128xf32>
    %c16_i32_59 = arith.constant 16 : i32
    %112 = arith.muli %arg1, %c16_i32_59 : i32
    %113 = arith.addi %112, %c3_i32 : i32
    %c50_i32_60 = arith.constant 50 : i32
    %114 = arith.cmpi slt, %113, %c50_i32_60 : i32
    %115 = arith.select %114, %108, %91 : vector<8x128xf32>
    %116 = arith.select %114, %111, %92 : vector<8x128xf32>
    %c0_61 = arith.constant 0 : index
    %c0_62 = arith.constant 0 : index
    %117 = vector.load %arg5[%c0_61, %c0_62] : memref<8x256xf32, #tpu.memory_space<vmem>>, vector<8x128xf32>
    tpu.vector_store %arg5[%c0_61, %c0_62], %115 {strides = array<i32>} : memref<8x256xf32, #tpu.memory_space<vmem>>, vector<8x128xf32>,
    %c0_63 = arith.constant 0 : index
    %c128_64 = arith.constant 128 : index
    %118 = vector.load %arg5[%c0_63, %c128_64] : memref<8x256xf32, #tpu.memory_space<vmem>>, vector<8x128xf32>
    tpu.vector_store %arg5[%c0_63, %c128_64], %116 {strides = array<i32>} : memref<8x256xf32, #tpu.memory_space<vmem>>, vector<8x128xf32>,
    %c4_i32 = arith.constant 4 : i32
    %c0_65 = arith.constant 0 : index
    %c0_66 = arith.constant 0 : index
    %119 = vector.load %arg5[%c0_65, %c0_66] : memref<8x256xf32, #tpu.memory_space<vmem>>, vector<8x256xf32>
    %120 = vector.extract_strided_slice %119 {offsets = [0, 0], sizes = [8, 128], strides = [1, 1]} : vector<8x256xf32> to vector<8x128xf32>
    %121 = vector.extract_strided_slice %119 {offsets = [0, 128], sizes = [8, 128], strides = [1, 1]} : vector<8x256xf32> to vector<8x128xf32>
    %c0_67 = arith.constant 0 : index
    %c0_68 = arith.constant 0 : index
    %122 = vector.load %arg3[%c0_67, %c0_68] : memref<256x128xf32, #tpu.memory_space<vmem>>, vector<256x128xf32>
    %cst_69 = arith.constant dense<0.000000e+00> : vector<8x128xf32>
    %123 = tpu.matmul %119, %122, %cst_69 {dimension_numbers = #tpu.dot_dimension_numbers<[1], [0], [0], [1], [0, 0, 1, 1], [], []>} : vector<8x256xf32>, vector<256x128xf32>, vector<8x128xf32> -> vector<8x128xf32>
    %124 = arith.index_cast %c4_i32 : i32 to index
    %c0_70 = arith.constant 0 : index
    %c0_71 = arith.constant 0 : index
    %125 = vector.load %arg2[%124, %c0_70, %c0_71] : memref<16x8x128xf32, #tpu.memory_space<vmem>>, vector<1x8x128xf32>
    %126 = vector.shape_cast %125 : vector<1x8x128xf32> to vector<8x128xf32>
    %127 = arith.addf %123, %126 : vector<8x128xf32>
    %128 = math.tanh %127 : vector<8x128xf32>
    %cst_72 = arith.constant 4.900000e+00 : f32
    %129 = vector.broadcast %cst_72 : f32 to vector<8x128xf32>
    %130 = arith.mulf %129, %121 : vector<8x128xf32>
    %131 = arith.subf %128, %130 : vector<8x128xf32>
    %cst_73 = arith.constant 4.800000e+00 : f32
    %132 = vector.broadcast %cst_73 : f32 to vector<8x128xf32>
    %133 = arith.mulf %132, %120 : vector<8x128xf32>
    %134 = arith.subf %131, %133 : vector<8x128xf32>
    %cst_74 = arith.constant 5.400000e-02 : f32
    %135 = vector.broadcast %cst_74 : f32 to vector<8x128xf32>
    %136 = arith.mulf %135, %134 : vector<8x128xf32>
    %137 = arith.addf %120, %136 : vector<8x128xf32>
    %cst_75 = arith.constant 5.400000e-02 : f32
    %138 = vector.broadcast %cst_75 : f32 to vector<8x128xf32>
    %139 = arith.mulf %138, %137 : vector<8x128xf32>
    %140 = arith.addf %121, %139 : vector<8x128xf32>
    %c16_i32_76 = arith.constant 16 : i32
    %141 = arith.muli %arg1, %c16_i32_76 : i32
    %142 = arith.addi %141, %c4_i32 : i32
    %c50_i32_77 = arith.constant 50 : i32
    %143 = arith.cmpi slt, %142, %c50_i32_77 : i32
    %144 = arith.select %143, %137, %120 : vector<8x128xf32>
    %145 = arith.select %143, %140, %121 : vector<8x128xf32>
    %c0_78 = arith.constant 0 : index
    %c0_79 = arith.constant 0 : index
    %146 = vector.load %arg5[%c0_78, %c0_79] : memref<8x256xf32, #tpu.memory_space<vmem>>, vector<8x128xf32>
    tpu.vector_store %arg5[%c0_78, %c0_79], %144 {strides = array<i32>} : memref<8x256xf32, #tpu.memory_space<vmem>>, vector<8x128xf32>,
    %c0_80 = arith.constant 0 : index
    %c128_81 = arith.constant 128 : index
    %147 = vector.load %arg5[%c0_80, %c128_81] : memref<8x256xf32, #tpu.memory_space<vmem>>, vector<8x128xf32>
    tpu.vector_store %arg5[%c0_80, %c128_81], %145 {strides = array<i32>} : memref<8x256xf32, #tpu.memory_space<vmem>>, vector<8x128xf32>,
    %c5_i32 = arith.constant 5 : i32
    %c0_82 = arith.constant 0 : index
    %c0_83 = arith.constant 0 : index
    %148 = vector.load %arg5[%c0_82, %c0_83] : memref<8x256xf32, #tpu.memory_space<vmem>>, vector<8x256xf32>
    %149 = vector.extract_strided_slice %148 {offsets = [0, 0], sizes = [8, 128], strides = [1, 1]} : vector<8x256xf32> to vector<8x128xf32>
    %150 = vector.extract_strided_slice %148 {offsets = [0, 128], sizes = [8, 128], strides = [1, 1]} : vector<8x256xf32> to vector<8x128xf32>
    %c0_84 = arith.constant 0 : index
    %c0_85 = arith.constant 0 : index
    %151 = vector.load %arg3[%c0_84, %c0_85] : memref<256x128xf32, #tpu.memory_space<vmem>>, vector<256x128xf32>
    %cst_86 = arith.constant dense<0.000000e+00> : vector<8x128xf32>
    %152 = tpu.matmul %148, %151, %cst_86 {dimension_numbers = #tpu.dot_dimension_numbers<[1], [0], [0], [1], [0, 0, 1, 1], [], []>} : vector<8x256xf32>, vector<256x128xf32>, vector<8x128xf32> -> vector<8x128xf32>
    %153 = arith.index_cast %c5_i32 : i32 to index
    %c0_87 = arith.constant 0 : index
    %c0_88 = arith.constant 0 : index
    %154 = vector.load %arg2[%153, %c0_87, %c0_88] : memref<16x8x128xf32, #tpu.memory_space<vmem>>, vector<1x8x128xf32>
    %155 = vector.shape_cast %154 : vector<1x8x128xf32> to vector<8x128xf32>
    %156 = arith.addf %152, %155 : vector<8x128xf32>
    %157 = math.tanh %156 : vector<8x128xf32>
    %cst_89 = arith.constant 4.900000e+00 : f32
    %158 = vector.broadcast %cst_89 : f32 to vector<8x128xf32>
    %159 = arith.mulf %158, %150 : vector<8x128xf32>
    %160 = arith.subf %157, %159 : vector<8x128xf32>
    %cst_90 = arith.constant 4.800000e+00 : f32
    %161 = vector.broadcast %cst_90 : f32 to vector<8x128xf32>
    %162 = arith.mulf %161, %149 : vector<8x128xf32>
    %163 = arith.subf %160, %162 : vector<8x128xf32>
    %cst_91 = arith.constant 5.400000e-02 : f32
    %164 = vector.broadcast %cst_91 : f32 to vector<8x128xf32>
    %165 = arith.mulf %164, %163 : vector<8x128xf32>
    %166 = arith.addf %149, %165 : vector<8x128xf32>
    %cst_92 = arith.constant 5.400000e-02 : f32
    %167 = vector.broadcast %cst_92 : f32 to vector<8x128xf32>
    %168 = arith.mulf %167, %166 : vector<8x128xf32>
    %169 = arith.addf %150, %168 : vector<8x128xf32>
    %c16_i32_93 = arith.constant 16 : i32
    %170 = arith.muli %arg1, %c16_i32_93 : i32
    %171 = arith.addi %170, %c5_i32 : i32
    %c50_i32_94 = arith.constant 50 : i32
    %172 = arith.cmpi slt, %171, %c50_i32_94 : i32
    %173 = arith.select %172, %166, %149 : vector<8x128xf32>
    %174 = arith.select %172, %169, %150 : vector<8x128xf32>
    %c0_95 = arith.constant 0 : index
    %c0_96 = arith.constant 0 : index
    %175 = vector.load %arg5[%c0_95, %c0_96] : memref<8x256xf32, #tpu.memory_space<vmem>>, vector<8x128xf32>
    tpu.vector_store %arg5[%c0_95, %c0_96], %173 {strides = array<i32>} : memref<8x256xf32, #tpu.memory_space<vmem>>, vector<8x128xf32>,
    %c0_97 = arith.constant 0 : index
    %c128_98 = arith.constant 128 : index
    %176 = vector.load %arg5[%c0_97, %c128_98] : memref<8x256xf32, #tpu.memory_space<vmem>>, vector<8x128xf32>
    tpu.vector_store %arg5[%c0_97, %c128_98], %174 {strides = array<i32>} : memref<8x256xf32, #tpu.memory_space<vmem>>, vector<8x128xf32>,
    %c6_i32 = arith.constant 6 : i32
    %c0_99 = arith.constant 0 : index
    %c0_100 = arith.constant 0 : index
    %177 = vector.load %arg5[%c0_99, %c0_100] : memref<8x256xf32, #tpu.memory_space<vmem>>, vector<8x256xf32>
    %178 = vector.extract_strided_slice %177 {offsets = [0, 0], sizes = [8, 128], strides = [1, 1]} : vector<8x256xf32> to vector<8x128xf32>
    %179 = vector.extract_strided_slice %177 {offsets = [0, 128], sizes = [8, 128], strides = [1, 1]} : vector<8x256xf32> to vector<8x128xf32>
    %c0_101 = arith.constant 0 : index
    %c0_102 = arith.constant 0 : index
    %180 = vector.load %arg3[%c0_101, %c0_102] : memref<256x128xf32, #tpu.memory_space<vmem>>, vector<256x128xf32>
    %cst_103 = arith.constant dense<0.000000e+00> : vector<8x128xf32>
    %181 = tpu.matmul %177, %180, %cst_103 {dimension_numbers = #tpu.dot_dimension_numbers<[1], [0], [0], [1], [0, 0, 1, 1], [], []>} : vector<8x256xf32>, vector<256x128xf32>, vector<8x128xf32> -> vector<8x128xf32>
    %182 = arith.index_cast %c6_i32 : i32 to index
    %c0_104 = arith.constant 0 : index
    %c0_105 = arith.constant 0 : index
    %183 = vector.load %arg2[%182, %c0_104, %c0_105] : memref<16x8x128xf32, #tpu.memory_space<vmem>>, vector<1x8x128xf32>
    %184 = vector.shape_cast %183 : vector<1x8x128xf32> to vector<8x128xf32>
    %185 = arith.addf %181, %184 : vector<8x128xf32>
    %186 = math.tanh %185 : vector<8x128xf32>
    %cst_106 = arith.constant 4.900000e+00 : f32
    %187 = vector.broadcast %cst_106 : f32 to vector<8x128xf32>
    %188 = arith.mulf %187, %179 : vector<8x128xf32>
    %189 = arith.subf %186, %188 : vector<8x128xf32>
    %cst_107 = arith.constant 4.800000e+00 : f32
    %190 = vector.broadcast %cst_107 : f32 to vector<8x128xf32>
    %191 = arith.mulf %190, %178 : vector<8x128xf32>
    %192 = arith.subf %189, %191 : vector<8x128xf32>
    %cst_108 = arith.constant 5.400000e-02 : f32
    %193 = vector.broadcast %cst_108 : f32 to vector<8x128xf32>
    %194 = arith.mulf %193, %192 : vector<8x128xf32>
    %195 = arith.addf %178, %194 : vector<8x128xf32>
    %cst_109 = arith.constant 5.400000e-02 : f32
    %196 = vector.broadcast %cst_109 : f32 to vector<8x128xf32>
    %197 = arith.mulf %196, %195 : vector<8x128xf32>
    %198 = arith.addf %179, %197 : vector<8x128xf32>
    %c16_i32_110 = arith.constant 16 : i32
    %199 = arith.muli %arg1, %c16_i32_110 : i32
    %200 = arith.addi %199, %c6_i32 : i32
    %c50_i32_111 = arith.constant 50 : i32
    %201 = arith.cmpi slt, %200, %c50_i32_111 : i32
    %202 = arith.select %201, %195, %178 : vector<8x128xf32>
    %203 = arith.select %201, %198, %179 : vector<8x128xf32>
    %c0_112 = arith.constant 0 : index
    %c0_113 = arith.constant 0 : index
    %204 = vector.load %arg5[%c0_112, %c0_113] : memref<8x256xf32, #tpu.memory_space<vmem>>, vector<8x128xf32>
    tpu.vector_store %arg5[%c0_112, %c0_113], %202 {strides = array<i32>} : memref<8x256xf32, #tpu.memory_space<vmem>>, vector<8x128xf32>,
    %c0_114 = arith.constant 0 : index
    %c128_115 = arith.constant 128 : index
    %205 = vector.load %arg5[%c0_114, %c128_115] : memref<8x256xf32, #tpu.memory_space<vmem>>, vector<8x128xf32>
    tpu.vector_store %arg5[%c0_114, %c128_115], %203 {strides = array<i32>} : memref<8x256xf32, #tpu.memory_space<vmem>>, vector<8x128xf32>,
    %c7_i32 = arith.constant 7 : i32
    %c0_116 = arith.constant 0 : index
    %c0_117 = arith.constant 0 : index
    %206 = vector.load %arg5[%c0_116, %c0_117] : memref<8x256xf32, #tpu.memory_space<vmem>>, vector<8x256xf32>
    %207 = vector.extract_strided_slice %206 {offsets = [0, 0], sizes = [8, 128], strides = [1, 1]} : vector<8x256xf32> to vector<8x128xf32>
    %208 = vector.extract_strided_slice %206 {offsets = [0, 128], sizes = [8, 128], strides = [1, 1]} : vector<8x256xf32> to vector<8x128xf32>
    %c0_118 = arith.constant 0 : index
    %c0_119 = arith.constant 0 : index
    %209 = vector.load %arg3[%c0_118, %c0_119] : memref<256x128xf32, #tpu.memory_space<vmem>>, vector<256x128xf32>
    %cst_120 = arith.constant dense<0.000000e+00> : vector<8x128xf32>
    %210 = tpu.matmul %206, %209, %cst_120 {dimension_numbers = #tpu.dot_dimension_numbers<[1], [0], [0], [1], [0, 0, 1, 1], [], []>} : vector<8x256xf32>, vector<256x128xf32>, vector<8x128xf32> -> vector<8x128xf32>
    %211 = arith.index_cast %c7_i32 : i32 to index
    %c0_121 = arith.constant 0 : index
    %c0_122 = arith.constant 0 : index
    %212 = vector.load %arg2[%211, %c0_121, %c0_122] : memref<16x8x128xf32, #tpu.memory_space<vmem>>, vector<1x8x128xf32>
    %213 = vector.shape_cast %212 : vector<1x8x128xf32> to vector<8x128xf32>
    %214 = arith.addf %210, %213 : vector<8x128xf32>
    %215 = math.tanh %214 : vector<8x128xf32>
    %cst_123 = arith.constant 4.900000e+00 : f32
    %216 = vector.broadcast %cst_123 : f32 to vector<8x128xf32>
    %217 = arith.mulf %216, %208 : vector<8x128xf32>
    %218 = arith.subf %215, %217 : vector<8x128xf32>
    %cst_124 = arith.constant 4.800000e+00 : f32
    %219 = vector.broadcast %cst_124 : f32 to vector<8x128xf32>
    %220 = arith.mulf %219, %207 : vector<8x128xf32>
    %221 = arith.subf %218, %220 : vector<8x128xf32>
    %cst_125 = arith.constant 5.400000e-02 : f32
    %222 = vector.broadcast %cst_125 : f32 to vector<8x128xf32>
    %223 = arith.mulf %222, %221 : vector<8x128xf32>
    %224 = arith.addf %207, %223 : vector<8x128xf32>
    %cst_126 = arith.constant 5.400000e-02 : f32
    %225 = vector.broadcast %cst_126 : f32 to vector<8x128xf32>
    %226 = arith.mulf %225, %224 : vector<8x128xf32>
    %227 = arith.addf %208, %226 : vector<8x128xf32>
    %c16_i32_127 = arith.constant 16 : i32
    %228 = arith.muli %arg1, %c16_i32_127 : i32
    %229 = arith.addi %228, %c7_i32 : i32
    %c50_i32_128 = arith.constant 50 : i32
    %230 = arith.cmpi slt, %229, %c50_i32_128 : i32
    %231 = arith.select %230, %224, %207 : vector<8x128xf32>
    %232 = arith.select %230, %227, %208 : vector<8x128xf32>
    %c0_129 = arith.constant 0 : index
    %c0_130 = arith.constant 0 : index
    %233 = vector.load %arg5[%c0_129, %c0_130] : memref<8x256xf32, #tpu.memory_space<vmem>>, vector<8x128xf32>
    tpu.vector_store %arg5[%c0_129, %c0_130], %231 {strides = array<i32>} : memref<8x256xf32, #tpu.memory_space<vmem>>, vector<8x128xf32>,
    %c0_131 = arith.constant 0 : index
    %c128_132 = arith.constant 128 : index
    %234 = vector.load %arg5[%c0_131, %c128_132] : memref<8x256xf32, #tpu.memory_space<vmem>>, vector<8x128xf32>
    tpu.vector_store %arg5[%c0_131, %c128_132], %232 {strides = array<i32>} : memref<8x256xf32, #tpu.memory_space<vmem>>, vector<8x128xf32>,
    %c8_i32 = arith.constant 8 : i32
    %c0_133 = arith.constant 0 : index
    %c0_134 = arith.constant 0 : index
    %235 = vector.load %arg5[%c0_133, %c0_134] : memref<8x256xf32, #tpu.memory_space<vmem>>, vector<8x256xf32>
    %236 = vector.extract_strided_slice %235 {offsets = [0, 0], sizes = [8, 128], strides = [1, 1]} : vector<8x256xf32> to vector<8x128xf32>
    %237 = vector.extract_strided_slice %235 {offsets = [0, 128], sizes = [8, 128], strides = [1, 1]} : vector<8x256xf32> to vector<8x128xf32>
    %c0_135 = arith.constant 0 : index
    %c0_136 = arith.constant 0 : index
    %238 = vector.load %arg3[%c0_135, %c0_136] : memref<256x128xf32, #tpu.memory_space<vmem>>, vector<256x128xf32>
    %cst_137 = arith.constant dense<0.000000e+00> : vector<8x128xf32>
    %239 = tpu.matmul %235, %238, %cst_137 {dimension_numbers = #tpu.dot_dimension_numbers<[1], [0], [0], [1], [0, 0, 1, 1], [], []>} : vector<8x256xf32>, vector<256x128xf32>, vector<8x128xf32> -> vector<8x128xf32>
    %240 = arith.index_cast %c8_i32 : i32 to index
    %c0_138 = arith.constant 0 : index
    %c0_139 = arith.constant 0 : index
    %241 = vector.load %arg2[%240, %c0_138, %c0_139] : memref<16x8x128xf32, #tpu.memory_space<vmem>>, vector<1x8x128xf32>
    %242 = vector.shape_cast %241 : vector<1x8x128xf32> to vector<8x128xf32>
    %243 = arith.addf %239, %242 : vector<8x128xf32>
    %244 = math.tanh %243 : vector<8x128xf32>
    %cst_140 = arith.constant 4.900000e+00 : f32
    %245 = vector.broadcast %cst_140 : f32 to vector<8x128xf32>
    %246 = arith.mulf %245, %237 : vector<8x128xf32>
    %247 = arith.subf %244, %246 : vector<8x128xf32>
    %cst_141 = arith.constant 4.800000e+00 : f32
    %248 = vector.broadcast %cst_141 : f32 to vector<8x128xf32>
    %249 = arith.mulf %248, %236 : vector<8x128xf32>
    %250 = arith.subf %247, %249 : vector<8x128xf32>
    %cst_142 = arith.constant 5.400000e-02 : f32
    %251 = vector.broadcast %cst_142 : f32 to vector<8x128xf32>
    %252 = arith.mulf %251, %250 : vector<8x128xf32>
    %253 = arith.addf %236, %252 : vector<8x128xf32>
    %cst_143 = arith.constant 5.400000e-02 : f32
    %254 = vector.broadcast %cst_143 : f32 to vector<8x128xf32>
    %255 = arith.mulf %254, %253 : vector<8x128xf32>
    %256 = arith.addf %237, %255 : vector<8x128xf32>
    %c16_i32_144 = arith.constant 16 : i32
    %257 = arith.muli %arg1, %c16_i32_144 : i32
    %258 = arith.addi %257, %c8_i32 : i32
    %c50_i32_145 = arith.constant 50 : i32
    %259 = arith.cmpi slt, %258, %c50_i32_145 : i32
    %260 = arith.select %259, %253, %236 : vector<8x128xf32>
    %261 = arith.select %259, %256, %237 : vector<8x128xf32>
    %c0_146 = arith.constant 0 : index
    %c0_147 = arith.constant 0 : index
    %262 = vector.load %arg5[%c0_146, %c0_147] : memref<8x256xf32, #tpu.memory_space<vmem>>, vector<8x128xf32>
    tpu.vector_store %arg5[%c0_146, %c0_147], %260 {strides = array<i32>} : memref<8x256xf32, #tpu.memory_space<vmem>>, vector<8x128xf32>,
    %c0_148 = arith.constant 0 : index
    %c128_149 = arith.constant 128 : index
    %263 = vector.load %arg5[%c0_148, %c128_149] : memref<8x256xf32, #tpu.memory_space<vmem>>, vector<8x128xf32>
    tpu.vector_store %arg5[%c0_148, %c128_149], %261 {strides = array<i32>} : memref<8x256xf32, #tpu.memory_space<vmem>>, vector<8x128xf32>,
    %c9_i32 = arith.constant 9 : i32
    %c0_150 = arith.constant 0 : index
    %c0_151 = arith.constant 0 : index
    %264 = vector.load %arg5[%c0_150, %c0_151] : memref<8x256xf32, #tpu.memory_space<vmem>>, vector<8x256xf32>
    %265 = vector.extract_strided_slice %264 {offsets = [0, 0], sizes = [8, 128], strides = [1, 1]} : vector<8x256xf32> to vector<8x128xf32>
    %266 = vector.extract_strided_slice %264 {offsets = [0, 128], sizes = [8, 128], strides = [1, 1]} : vector<8x256xf32> to vector<8x128xf32>
    %c0_152 = arith.constant 0 : index
    %c0_153 = arith.constant 0 : index
    %267 = vector.load %arg3[%c0_152, %c0_153] : memref<256x128xf32, #tpu.memory_space<vmem>>, vector<256x128xf32>
    %cst_154 = arith.constant dense<0.000000e+00> : vector<8x128xf32>
    %268 = tpu.matmul %264, %267, %cst_154 {dimension_numbers = #tpu.dot_dimension_numbers<[1], [0], [0], [1], [0, 0, 1, 1], [], []>} : vector<8x256xf32>, vector<256x128xf32>, vector<8x128xf32> -> vector<8x128xf32>
    %269 = arith.index_cast %c9_i32 : i32 to index
    %c0_155 = arith.constant 0 : index
    %c0_156 = arith.constant 0 : index
    %270 = vector.load %arg2[%269, %c0_155, %c0_156] : memref<16x8x128xf32, #tpu.memory_space<vmem>>, vector<1x8x128xf32>
    %271 = vector.shape_cast %270 : vector<1x8x128xf32> to vector<8x128xf32>
    %272 = arith.addf %268, %271 : vector<8x128xf32>
    %273 = math.tanh %272 : vector<8x128xf32>
    %cst_157 = arith.constant 4.900000e+00 : f32
    %274 = vector.broadcast %cst_157 : f32 to vector<8x128xf32>
    %275 = arith.mulf %274, %266 : vector<8x128xf32>
    %276 = arith.subf %273, %275 : vector<8x128xf32>
    %cst_158 = arith.constant 4.800000e+00 : f32
    %277 = vector.broadcast %cst_158 : f32 to vector<8x128xf32>
    %278 = arith.mulf %277, %265 : vector<8x128xf32>
    %279 = arith.subf %276, %278 : vector<8x128xf32>
    %cst_159 = arith.constant 5.400000e-02 : f32
    %280 = vector.broadcast %cst_159 : f32 to vector<8x128xf32>
    %281 = arith.mulf %280, %279 : vector<8x128xf32>
    %282 = arith.addf %265, %281 : vector<8x128xf32>
    %cst_160 = arith.constant 5.400000e-02 : f32
    %283 = vector.broadcast %cst_160 : f32 to vector<8x128xf32>
    %284 = arith.mulf %283, %282 : vector<8x128xf32>
    %285 = arith.addf %266, %284 : vector<8x128xf32>
    %c16_i32_161 = arith.constant 16 : i32
    %286 = arith.muli %arg1, %c16_i32_161 : i32
    %287 = arith.addi %286, %c9_i32 : i32
    %c50_i32_162 = arith.constant 50 : i32
    %288 = arith.cmpi slt, %287, %c50_i32_162 : i32
    %289 = arith.select %288, %282, %265 : vector<8x128xf32>
    %290 = arith.select %288, %285, %266 : vector<8x128xf32>
    %c0_163 = arith.constant 0 : index
    %c0_164 = arith.constant 0 : index
    %291 = vector.load %arg5[%c0_163, %c0_164] : memref<8x256xf32, #tpu.memory_space<vmem>>, vector<8x128xf32>
    tpu.vector_store %arg5[%c0_163, %c0_164], %289 {strides = array<i32>} : memref<8x256xf32, #tpu.memory_space<vmem>>, vector<8x128xf32>,
    %c0_165 = arith.constant 0 : index
    %c128_166 = arith.constant 128 : index
    %292 = vector.load %arg5[%c0_165, %c128_166] : memref<8x256xf32, #tpu.memory_space<vmem>>, vector<8x128xf32>
    tpu.vector_store %arg5[%c0_165, %c128_166], %290 {strides = array<i32>} : memref<8x256xf32, #tpu.memory_space<vmem>>, vector<8x128xf32>,
    %c10_i32 = arith.constant 10 : i32
    %c0_167 = arith.constant 0 : index
    %c0_168 = arith.constant 0 : index
    %293 = vector.load %arg5[%c0_167, %c0_168] : memref<8x256xf32, #tpu.memory_space<vmem>>, vector<8x256xf32>
    %294 = vector.extract_strided_slice %293 {offsets = [0, 0], sizes = [8, 128], strides = [1, 1]} : vector<8x256xf32> to vector<8x128xf32>
    %295 = vector.extract_strided_slice %293 {offsets = [0, 128], sizes = [8, 128], strides = [1, 1]} : vector<8x256xf32> to vector<8x128xf32>
    %c0_169 = arith.constant 0 : index
    %c0_170 = arith.constant 0 : index
    %296 = vector.load %arg3[%c0_169, %c0_170] : memref<256x128xf32, #tpu.memory_space<vmem>>, vector<256x128xf32>
    %cst_171 = arith.constant dense<0.000000e+00> : vector<8x128xf32>
    %297 = tpu.matmul %293, %296, %cst_171 {dimension_numbers = #tpu.dot_dimension_numbers<[1], [0], [0], [1], [0, 0, 1, 1], [], []>} : vector<8x256xf32>, vector<256x128xf32>, vector<8x128xf32> -> vector<8x128xf32>
    %298 = arith.index_cast %c10_i32 : i32 to index
    %c0_172 = arith.constant 0 : index
    %c0_173 = arith.constant 0 : index
    %299 = vector.load %arg2[%298, %c0_172, %c0_173] : memref<16x8x128xf32, #tpu.memory_space<vmem>>, vector<1x8x128xf32>
    %300 = vector.shape_cast %299 : vector<1x8x128xf32> to vector<8x128xf32>
    %301 = arith.addf %297, %300 : vector<8x128xf32>
    %302 = math.tanh %301 : vector<8x128xf32>
    %cst_174 = arith.constant 4.900000e+00 : f32
    %303 = vector.broadcast %cst_174 : f32 to vector<8x128xf32>
    %304 = arith.mulf %303, %295 : vector<8x128xf32>
    %305 = arith.subf %302, %304 : vector<8x128xf32>
    %cst_175 = arith.constant 4.800000e+00 : f32
    %306 = vector.broadcast %cst_175 : f32 to vector<8x128xf32>
    %307 = arith.mulf %306, %294 : vector<8x128xf32>
    %308 = arith.subf %305, %307 : vector<8x128xf32>
    %cst_176 = arith.constant 5.400000e-02 : f32
    %309 = vector.broadcast %cst_176 : f32 to vector<8x128xf32>
    %310 = arith.mulf %309, %308 : vector<8x128xf32>
    %311 = arith.addf %294, %310 : vector<8x128xf32>
    %cst_177 = arith.constant 5.400000e-02 : f32
    %312 = vector.broadcast %cst_177 : f32 to vector<8x128xf32>
    %313 = arith.mulf %312, %311 : vector<8x128xf32>
    %314 = arith.addf %295, %313 : vector<8x128xf32>
    %c16_i32_178 = arith.constant 16 : i32
    %315 = arith.muli %arg1, %c16_i32_178 : i32
    %316 = arith.addi %315, %c10_i32 : i32
    %c50_i32_179 = arith.constant 50 : i32
    %317 = arith.cmpi slt, %316, %c50_i32_179 : i32
    %318 = arith.select %317, %311, %294 : vector<8x128xf32>
    %319 = arith.select %317, %314, %295 : vector<8x128xf32>
    %c0_180 = arith.constant 0 : index
    %c0_181 = arith.constant 0 : index
    %320 = vector.load %arg5[%c0_180, %c0_181] : memref<8x256xf32, #tpu.memory_space<vmem>>, vector<8x128xf32>
    tpu.vector_store %arg5[%c0_180, %c0_181], %318 {strides = array<i32>} : memref<8x256xf32, #tpu.memory_space<vmem>>, vector<8x128xf32>,
    %c0_182 = arith.constant 0 : index
    %c128_183 = arith.constant 128 : index
    %321 = vector.load %arg5[%c0_182, %c128_183] : memref<8x256xf32, #tpu.memory_space<vmem>>, vector<8x128xf32>
    tpu.vector_store %arg5[%c0_182, %c128_183], %319 {strides = array<i32>} : memref<8x256xf32, #tpu.memory_space<vmem>>, vector<8x128xf32>,
    %c11_i32 = arith.constant 11 : i32
    %c0_184 = arith.constant 0 : index
    %c0_185 = arith.constant 0 : index
    %322 = vector.load %arg5[%c0_184, %c0_185] : memref<8x256xf32, #tpu.memory_space<vmem>>, vector<8x256xf32>
    %323 = vector.extract_strided_slice %322 {offsets = [0, 0], sizes = [8, 128], strides = [1, 1]} : vector<8x256xf32> to vector<8x128xf32>
    %324 = vector.extract_strided_slice %322 {offsets = [0, 128], sizes = [8, 128], strides = [1, 1]} : vector<8x256xf32> to vector<8x128xf32>
    %c0_186 = arith.constant 0 : index
    %c0_187 = arith.constant 0 : index
    %325 = vector.load %arg3[%c0_186, %c0_187] : memref<256x128xf32, #tpu.memory_space<vmem>>, vector<256x128xf32>
    %cst_188 = arith.constant dense<0.000000e+00> : vector<8x128xf32>
    %326 = tpu.matmul %322, %325, %cst_188 {dimension_numbers = #tpu.dot_dimension_numbers<[1], [0], [0], [1], [0, 0, 1, 1], [], []>} : vector<8x256xf32>, vector<256x128xf32>, vector<8x128xf32> -> vector<8x128xf32>
    %327 = arith.index_cast %c11_i32 : i32 to index
    %c0_189 = arith.constant 0 : index
    %c0_190 = arith.constant 0 : index
    %328 = vector.load %arg2[%327, %c0_189, %c0_190] : memref<16x8x128xf32, #tpu.memory_space<vmem>>, vector<1x8x128xf32>
    %329 = vector.shape_cast %328 : vector<1x8x128xf32> to vector<8x128xf32>
    %330 = arith.addf %326, %329 : vector<8x128xf32>
    %331 = math.tanh %330 : vector<8x128xf32>
    %cst_191 = arith.constant 4.900000e+00 : f32
    %332 = vector.broadcast %cst_191 : f32 to vector<8x128xf32>
    %333 = arith.mulf %332, %324 : vector<8x128xf32>
    %334 = arith.subf %331, %333 : vector<8x128xf32>
    %cst_192 = arith.constant 4.800000e+00 : f32
    %335 = vector.broadcast %cst_192 : f32 to vector<8x128xf32>
    %336 = arith.mulf %335, %323 : vector<8x128xf32>
    %337 = arith.subf %334, %336 : vector<8x128xf32>
    %cst_193 = arith.constant 5.400000e-02 : f32
    %338 = vector.broadcast %cst_193 : f32 to vector<8x128xf32>
    %339 = arith.mulf %338, %337 : vector<8x128xf32>
    %340 = arith.addf %323, %339 : vector<8x128xf32>
    %cst_194 = arith.constant 5.400000e-02 : f32
    %341 = vector.broadcast %cst_194 : f32 to vector<8x128xf32>
    %342 = arith.mulf %341, %340 : vector<8x128xf32>
    %343 = arith.addf %324, %342 : vector<8x128xf32>
    %c16_i32_195 = arith.constant 16 : i32
    %344 = arith.muli %arg1, %c16_i32_195 : i32
    %345 = arith.addi %344, %c11_i32 : i32
    %c50_i32_196 = arith.constant 50 : i32
    %346 = arith.cmpi slt, %345, %c50_i32_196 : i32
    %347 = arith.select %346, %340, %323 : vector<8x128xf32>
    %348 = arith.select %346, %343, %324 : vector<8x128xf32>
    %c0_197 = arith.constant 0 : index
    %c0_198 = arith.constant 0 : index
    %349 = vector.load %arg5[%c0_197, %c0_198] : memref<8x256xf32, #tpu.memory_space<vmem>>, vector<8x128xf32>
    tpu.vector_store %arg5[%c0_197, %c0_198], %347 {strides = array<i32>} : memref<8x256xf32, #tpu.memory_space<vmem>>, vector<8x128xf32>,
    %c0_199 = arith.constant 0 : index
    %c128_200 = arith.constant 128 : index
    %350 = vector.load %arg5[%c0_199, %c128_200] : memref<8x256xf32, #tpu.memory_space<vmem>>, vector<8x128xf32>
    tpu.vector_store %arg5[%c0_199, %c128_200], %348 {strides = array<i32>} : memref<8x256xf32, #tpu.memory_space<vmem>>, vector<8x128xf32>,
    %c12_i32 = arith.constant 12 : i32
    %c0_201 = arith.constant 0 : index
    %c0_202 = arith.constant 0 : index
    %351 = vector.load %arg5[%c0_201, %c0_202] : memref<8x256xf32, #tpu.memory_space<vmem>>, vector<8x256xf32>
    %352 = vector.extract_strided_slice %351 {offsets = [0, 0], sizes = [8, 128], strides = [1, 1]} : vector<8x256xf32> to vector<8x128xf32>
    %353 = vector.extract_strided_slice %351 {offsets = [0, 128], sizes = [8, 128], strides = [1, 1]} : vector<8x256xf32> to vector<8x128xf32>
    %c0_203 = arith.constant 0 : index
    %c0_204 = arith.constant 0 : index
    %354 = vector.load %arg3[%c0_203, %c0_204] : memref<256x128xf32, #tpu.memory_space<vmem>>, vector<256x128xf32>
    %cst_205 = arith.constant dense<0.000000e+00> : vector<8x128xf32>
    %355 = tpu.matmul %351, %354, %cst_205 {dimension_numbers = #tpu.dot_dimension_numbers<[1], [0], [0], [1], [0, 0, 1, 1], [], []>} : vector<8x256xf32>, vector<256x128xf32>, vector<8x128xf32> -> vector<8x128xf32>
    %356 = arith.index_cast %c12_i32 : i32 to index
    %c0_206 = arith.constant 0 : index
    %c0_207 = arith.constant 0 : index
    %357 = vector.load %arg2[%356, %c0_206, %c0_207] : memref<16x8x128xf32, #tpu.memory_space<vmem>>, vector<1x8x128xf32>
    %358 = vector.shape_cast %357 : vector<1x8x128xf32> to vector<8x128xf32>
    %359 = arith.addf %355, %358 : vector<8x128xf32>
    %360 = math.tanh %359 : vector<8x128xf32>
    %cst_208 = arith.constant 4.900000e+00 : f32
    %361 = vector.broadcast %cst_208 : f32 to vector<8x128xf32>
    %362 = arith.mulf %361, %353 : vector<8x128xf32>
    %363 = arith.subf %360, %362 : vector<8x128xf32>
    %cst_209 = arith.constant 4.800000e+00 : f32
    %364 = vector.broadcast %cst_209 : f32 to vector<8x128xf32>
    %365 = arith.mulf %364, %352 : vector<8x128xf32>
    %366 = arith.subf %363, %365 : vector<8x128xf32>
    %cst_210 = arith.constant 5.400000e-02 : f32
    %367 = vector.broadcast %cst_210 : f32 to vector<8x128xf32>
    %368 = arith.mulf %367, %366 : vector<8x128xf32>
    %369 = arith.addf %352, %368 : vector<8x128xf32>
    %cst_211 = arith.constant 5.400000e-02 : f32
    %370 = vector.broadcast %cst_211 : f32 to vector<8x128xf32>
    %371 = arith.mulf %370, %369 : vector<8x128xf32>
    %372 = arith.addf %353, %371 : vector<8x128xf32>
    %c16_i32_212 = arith.constant 16 : i32
    %373 = arith.muli %arg1, %c16_i32_212 : i32
    %374 = arith.addi %373, %c12_i32 : i32
    %c50_i32_213 = arith.constant 50 : i32
    %375 = arith.cmpi slt, %374, %c50_i32_213 : i32
    %376 = arith.select %375, %369, %352 : vector<8x128xf32>
    %377 = arith.select %375, %372, %353 : vector<8x128xf32>
    %c0_214 = arith.constant 0 : index
    %c0_215 = arith.constant 0 : index
    %378 = vector.load %arg5[%c0_214, %c0_215] : memref<8x256xf32, #tpu.memory_space<vmem>>, vector<8x128xf32>
    tpu.vector_store %arg5[%c0_214, %c0_215], %376 {strides = array<i32>} : memref<8x256xf32, #tpu.memory_space<vmem>>, vector<8x128xf32>,
    %c0_216 = arith.constant 0 : index
    %c128_217 = arith.constant 128 : index
    %379 = vector.load %arg5[%c0_216, %c128_217] : memref<8x256xf32, #tpu.memory_space<vmem>>, vector<8x128xf32>
    tpu.vector_store %arg5[%c0_216, %c128_217], %377 {strides = array<i32>} : memref<8x256xf32, #tpu.memory_space<vmem>>, vector<8x128xf32>,
    %c13_i32 = arith.constant 13 : i32
    %c0_218 = arith.constant 0 : index
    %c0_219 = arith.constant 0 : index
    %380 = vector.load %arg5[%c0_218, %c0_219] : memref<8x256xf32, #tpu.memory_space<vmem>>, vector<8x256xf32>
    %381 = vector.extract_strided_slice %380 {offsets = [0, 0], sizes = [8, 128], strides = [1, 1]} : vector<8x256xf32> to vector<8x128xf32>
    %382 = vector.extract_strided_slice %380 {offsets = [0, 128], sizes = [8, 128], strides = [1, 1]} : vector<8x256xf32> to vector<8x128xf32>
    %c0_220 = arith.constant 0 : index
    %c0_221 = arith.constant 0 : index
    %383 = vector.load %arg3[%c0_220, %c0_221] : memref<256x128xf32, #tpu.memory_space<vmem>>, vector<256x128xf32>
    %cst_222 = arith.constant dense<0.000000e+00> : vector<8x128xf32>
    %384 = tpu.matmul %380, %383, %cst_222 {dimension_numbers = #tpu.dot_dimension_numbers<[1], [0], [0], [1], [0, 0, 1, 1], [], []>} : vector<8x256xf32>, vector<256x128xf32>, vector<8x128xf32> -> vector<8x128xf32>
    %385 = arith.index_cast %c13_i32 : i32 to index
    %c0_223 = arith.constant 0 : index
    %c0_224 = arith.constant 0 : index
    %386 = vector.load %arg2[%385, %c0_223, %c0_224] : memref<16x8x128xf32, #tpu.memory_space<vmem>>, vector<1x8x128xf32>
    %387 = vector.shape_cast %386 : vector<1x8x128xf32> to vector<8x128xf32>
    %388 = arith.addf %384, %387 : vector<8x128xf32>
    %389 = math.tanh %388 : vector<8x128xf32>
    %cst_225 = arith.constant 4.900000e+00 : f32
    %390 = vector.broadcast %cst_225 : f32 to vector<8x128xf32>
    %391 = arith.mulf %390, %382 : vector<8x128xf32>
    %392 = arith.subf %389, %391 : vector<8x128xf32>
    %cst_226 = arith.constant 4.800000e+00 : f32
    %393 = vector.broadcast %cst_226 : f32 to vector<8x128xf32>
    %394 = arith.mulf %393, %381 : vector<8x128xf32>
    %395 = arith.subf %392, %394 : vector<8x128xf32>
    %cst_227 = arith.constant 5.400000e-02 : f32
    %396 = vector.broadcast %cst_227 : f32 to vector<8x128xf32>
    %397 = arith.mulf %396, %395 : vector<8x128xf32>
    %398 = arith.addf %381, %397 : vector<8x128xf32>
    %cst_228 = arith.constant 5.400000e-02 : f32
    %399 = vector.broadcast %cst_228 : f32 to vector<8x128xf32>
    %400 = arith.mulf %399, %398 : vector<8x128xf32>
    %401 = arith.addf %382, %400 : vector<8x128xf32>
    %c16_i32_229 = arith.constant 16 : i32
    %402 = arith.muli %arg1, %c16_i32_229 : i32
    %403 = arith.addi %402, %c13_i32 : i32
    %c50_i32_230 = arith.constant 50 : i32
    %404 = arith.cmpi slt, %403, %c50_i32_230 : i32
    %405 = arith.select %404, %398, %381 : vector<8x128xf32>
    %406 = arith.select %404, %401, %382 : vector<8x128xf32>
    %c0_231 = arith.constant 0 : index
    %c0_232 = arith.constant 0 : index
    %407 = vector.load %arg5[%c0_231, %c0_232] : memref<8x256xf32, #tpu.memory_space<vmem>>, vector<8x128xf32>
    tpu.vector_store %arg5[%c0_231, %c0_232], %405 {strides = array<i32>} : memref<8x256xf32, #tpu.memory_space<vmem>>, vector<8x128xf32>,
    %c0_233 = arith.constant 0 : index
    %c128_234 = arith.constant 128 : index
    %408 = vector.load %arg5[%c0_233, %c128_234] : memref<8x256xf32, #tpu.memory_space<vmem>>, vector<8x128xf32>
    tpu.vector_store %arg5[%c0_233, %c128_234], %406 {strides = array<i32>} : memref<8x256xf32, #tpu.memory_space<vmem>>, vector<8x128xf32>,
    %c14_i32 = arith.constant 14 : i32
    %c0_235 = arith.constant 0 : index
    %c0_236 = arith.constant 0 : index
    %409 = vector.load %arg5[%c0_235, %c0_236] : memref<8x256xf32, #tpu.memory_space<vmem>>, vector<8x256xf32>
    %410 = vector.extract_strided_slice %409 {offsets = [0, 0], sizes = [8, 128], strides = [1, 1]} : vector<8x256xf32> to vector<8x128xf32>
    %411 = vector.extract_strided_slice %409 {offsets = [0, 128], sizes = [8, 128], strides = [1, 1]} : vector<8x256xf32> to vector<8x128xf32>
    %c0_237 = arith.constant 0 : index
    %c0_238 = arith.constant 0 : index
    %412 = vector.load %arg3[%c0_237, %c0_238] : memref<256x128xf32, #tpu.memory_space<vmem>>, vector<256x128xf32>
    %cst_239 = arith.constant dense<0.000000e+00> : vector<8x128xf32>
    %413 = tpu.matmul %409, %412, %cst_239 {dimension_numbers = #tpu.dot_dimension_numbers<[1], [0], [0], [1], [0, 0, 1, 1], [], []>} : vector<8x256xf32>, vector<256x128xf32>, vector<8x128xf32> -> vector<8x128xf32>
    %414 = arith.index_cast %c14_i32 : i32 to index
    %c0_240 = arith.constant 0 : index
    %c0_241 = arith.constant 0 : index
    %415 = vector.load %arg2[%414, %c0_240, %c0_241] : memref<16x8x128xf32, #tpu.memory_space<vmem>>, vector<1x8x128xf32>
    %416 = vector.shape_cast %415 : vector<1x8x128xf32> to vector<8x128xf32>
    %417 = arith.addf %413, %416 : vector<8x128xf32>
    %418 = math.tanh %417 : vector<8x128xf32>
    %cst_242 = arith.constant 4.900000e+00 : f32
    %419 = vector.broadcast %cst_242 : f32 to vector<8x128xf32>
    %420 = arith.mulf %419, %411 : vector<8x128xf32>
    %421 = arith.subf %418, %420 : vector<8x128xf32>
    %cst_243 = arith.constant 4.800000e+00 : f32
    %422 = vector.broadcast %cst_243 : f32 to vector<8x128xf32>
    %423 = arith.mulf %422, %410 : vector<8x128xf32>
    %424 = arith.subf %421, %423 : vector<8x128xf32>
    %cst_244 = arith.constant 5.400000e-02 : f32
    %425 = vector.broadcast %cst_244 : f32 to vector<8x128xf32>
    %426 = arith.mulf %425, %424 : vector<8x128xf32>
    %427 = arith.addf %410, %426 : vector<8x128xf32>
    %cst_245 = arith.constant 5.400000e-02 : f32
    %428 = vector.broadcast %cst_245 : f32 to vector<8x128xf32>
    %429 = arith.mulf %428, %427 : vector<8x128xf32>
    %430 = arith.addf %411, %429 : vector<8x128xf32>
    %c16_i32_246 = arith.constant 16 : i32
    %431 = arith.muli %arg1, %c16_i32_246 : i32
    %432 = arith.addi %431, %c14_i32 : i32
    %c50_i32_247 = arith.constant 50 : i32
    %433 = arith.cmpi slt, %432, %c50_i32_247 : i32
    %434 = arith.select %433, %427, %410 : vector<8x128xf32>
    %435 = arith.select %433, %430, %411 : vector<8x128xf32>
    %c0_248 = arith.constant 0 : index
    %c0_249 = arith.constant 0 : index
    %436 = vector.load %arg5[%c0_248, %c0_249] : memref<8x256xf32, #tpu.memory_space<vmem>>, vector<8x128xf32>
    tpu.vector_store %arg5[%c0_248, %c0_249], %434 {strides = array<i32>} : memref<8x256xf32, #tpu.memory_space<vmem>>, vector<8x128xf32>,
    %c0_250 = arith.constant 0 : index
    %c128_251 = arith.constant 128 : index
    %437 = vector.load %arg5[%c0_250, %c128_251] : memref<8x256xf32, #tpu.memory_space<vmem>>, vector<8x128xf32>
    tpu.vector_store %arg5[%c0_250, %c128_251], %435 {strides = array<i32>} : memref<8x256xf32, #tpu.memory_space<vmem>>, vector<8x128xf32>,
    %c15_i32 = arith.constant 15 : i32
    %c0_252 = arith.constant 0 : index
    %c0_253 = arith.constant 0 : index
    %438 = vector.load %arg5[%c0_252, %c0_253] : memref<8x256xf32, #tpu.memory_space<vmem>>, vector<8x256xf32>
    %439 = vector.extract_strided_slice %438 {offsets = [0, 0], sizes = [8, 128], strides = [1, 1]} : vector<8x256xf32> to vector<8x128xf32>
    %440 = vector.extract_strided_slice %438 {offsets = [0, 128], sizes = [8, 128], strides = [1, 1]} : vector<8x256xf32> to vector<8x128xf32>
    %c0_254 = arith.constant 0 : index
    %c0_255 = arith.constant 0 : index
    %441 = vector.load %arg3[%c0_254, %c0_255] : memref<256x128xf32, #tpu.memory_space<vmem>>, vector<256x128xf32>
    %cst_256 = arith.constant dense<0.000000e+00> : vector<8x128xf32>
    %442 = tpu.matmul %438, %441, %cst_256 {dimension_numbers = #tpu.dot_dimension_numbers<[1], [0], [0], [1], [0, 0, 1, 1], [], []>} : vector<8x256xf32>, vector<256x128xf32>, vector<8x128xf32> -> vector<8x128xf32>
    %443 = arith.index_cast %c15_i32 : i32 to index
    %c0_257 = arith.constant 0 : index
    %c0_258 = arith.constant 0 : index
    %444 = vector.load %arg2[%443, %c0_257, %c0_258] : memref<16x8x128xf32, #tpu.memory_space<vmem>>, vector<1x8x128xf32>
    %445 = vector.shape_cast %444 : vector<1x8x128xf32> to vector<8x128xf32>
    %446 = arith.addf %442, %445 : vector<8x128xf32>
    %447 = math.tanh %446 : vector<8x128xf32>
    %cst_259 = arith.constant 4.900000e+00 : f32
    %448 = vector.broadcast %cst_259 : f32 to vector<8x128xf32>
    %449 = arith.mulf %448, %440 : vector<8x128xf32>
    %450 = arith.subf %447, %449 : vector<8x128xf32>
    %cst_260 = arith.constant 4.800000e+00 : f32
    %451 = vector.broadcast %cst_260 : f32 to vector<8x128xf32>
    %452 = arith.mulf %451, %439 : vector<8x128xf32>
    %453 = arith.subf %450, %452 : vector<8x128xf32>
    %cst_261 = arith.constant 5.400000e-02 : f32
    %454 = vector.broadcast %cst_261 : f32 to vector<8x128xf32>
    %455 = arith.mulf %454, %453 : vector<8x128xf32>
    %456 = arith.addf %439, %455 : vector<8x128xf32>
    %cst_262 = arith.constant 5.400000e-02 : f32
    %457 = vector.broadcast %cst_262 : f32 to vector<8x128xf32>
    %458 = arith.mulf %457, %456 : vector<8x128xf32>
    %459 = arith.addf %440, %458 : vector<8x128xf32>
    %c16_i32_263 = arith.constant 16 : i32
    %460 = arith.muli %arg1, %c16_i32_263 : i32
    %461 = arith.addi %460, %c15_i32 : i32
    %c50_i32_264 = arith.constant 50 : i32
    %462 = arith.cmpi slt, %461, %c50_i32_264 : i32
    %463 = arith.select %462, %456, %439 : vector<8x128xf32>
    %464 = arith.select %462, %459, %440 : vector<8x128xf32>
    %c0_265 = arith.constant 0 : index
    %c0_266 = arith.constant 0 : index
    %465 = vector.load %arg5[%c0_265, %c0_266] : memref<8x256xf32, #tpu.memory_space<vmem>>, vector<8x128xf32>
    tpu.vector_store %arg5[%c0_265, %c0_266], %463 {strides = array<i32>} : memref<8x256xf32, #tpu.memory_space<vmem>>, vector<8x128xf32>,
    %c0_267 = arith.constant 0 : index
    %c128_268 = arith.constant 128 : index
    %466 = vector.load %arg5[%c0_267, %c128_268] : memref<8x256xf32, #tpu.memory_space<vmem>>, vector<8x128xf32>
    tpu.vector_store %arg5[%c0_267, %c128_268], %464 {strides = array<i32>} : memref<8x256xf32, #tpu.memory_space<vmem>>, vector<8x128xf32>,
    %c16_i32_269 = arith.constant 16 : i32
    %c3_i32_270 = arith.constant 3 : i32
    %467 = arith.cmpi eq, %arg1, %c3_i32_270 : i32
    %468 = arith.extui %467 : i1 to i32
    %c0_i32_271 = arith.constant 0 : i32
    %469 = arith.cmpi ne, %468, %c0_i32_271 : i32
    scf.if %469 {
      %c0_272 = arith.constant 0 : index
      %c128_273 = arith.constant 128 : index
      %470 = vector.load %arg5[%c0_272, %c128_273] : memref<8x256xf32, #tpu.memory_space<vmem>>, vector<8x128xf32>
      %c0_274 = arith.constant 0 : index
      %c0_275 = arith.constant 0 : index
      %471 = vector.load %arg4[%c0_274, %c0_275] : memref<8x128xf32, #tpu.memory_space<vmem>>, vector<8x128xf32>
      tpu.vector_store %arg4[%c0_274, %c0_275], %470 {strides = array<i32>} : memref<8x128xf32, #tpu.memory_space<vmem>>, vector<8x128xf32>,
    } else {
    }
    return
  }
  func.func @transform_0(%arg0: i32, %arg1: i32) -> (i32, i32, i32) {
    %c0_i32 = arith.constant 0 : i32
    %c0_i32_0 = arith.constant 0 : i32
    return %arg1, %arg0, %c0_i32 : i32, i32, i32
  }
  func.func @transform_1(%arg0: i32, %arg1: i32) -> (i32, i32) {
    %c0_i32 = arith.constant 0 : i32
    %c0_i32_0 = arith.constant 0 : i32
    %c0_i32_1 = arith.constant 0 : i32
    return %c0_i32, %c0_i32_0 : i32, i32
  }
  func.func @transform_2(%arg0: i32, %arg1: i32) -> (i32, i32) {
    %c0_i32 = arith.constant 0 : i32
    %c0_i32_0 = arith.constant 0 : i32
    return %arg0, %c0_i32 : i32, i32
  }
}

</mosaic_0001>

<bundles_post_ra>
// kernel: tpu_custom_call.1
= control target key start
LH: loop header
LB: loop body
LE: loop exit
PB: predicated region body
PF: predicated region fallthrough
CT: control target
= control target key end

     0   :  { %7 = vsyncpa [#allocation4], 0  ;;  %s4043_s0 = inlined_call_operand.hbm [shape: f32[64,8,128], index: 0, kind: input, shape index: {}]   ;;  %s4044_s1 = inlined_call_operand.hbm [shape: f32[256,128], index: 1, kind: input, shape index: {}]   ;;  %s4045_s2 = inlined_call_operand.hbm [shape: f32[8,128], index: 2, kind: output, shape index: {}]  }
   0x1   :  { %9 = vsyncpa [#allocation4 + $0x1], 0 }
   0x2   :  { %10 = vsyncpa [#allocation7], 0 }
   0x3   :  { %11 = vsyncpa [#allocation5], 0  ;;  %s3123_s9 = smov 0   ;;  %s3125_s10 = smov 0  }
   0x4   :  { %s3127_s11 = smov 0   ;;  %s3129_s12 = smov 0  }
   0x5   :  { %s3131_s13 = smov 0   ;;  %s3133_s14 = smov 0  }
   0x6 LB: > { %s2263_s15 = sadd.s32 4294967295, %s3100_s14   ;;  %p51_p0 = scmp.ne.s32.totalorder %s3084_s10, %s3080_s9  ;;  %s3100_s14 = sphi %s3133_s14, %s17_s14   ;;  %s3096_s13 = sphi %s3131_s13, %s4056_s13   ;;  %s3092_s12 = sphi %s3129_s12, %s4055_s12   ;;  %s3088_s11 = sphi %s3127_s11, %s4054_s11   ;;  %s3084_s10 = sphi %s3125_s10, %s4053_s10   ;;  %s3080_s9 = sphi %s3123_s9, %s4052_s9  }
   0x7   : > { %p3155_p1 = scmp.eq.s32.totalorder %s2263_s15, 0  ;;  %p2264_p2 = scmp.ge.s32.totalorder %s3100_s14, 1 }
   0x8   : > { %p109_p3 = scmp.lt.s32.totalorder %s3100_s14, 5  ;;  %s3102_s19 = smov [#allocation6]  }
   0x9   : > { %p3163_p4 = por %p3155_p1, %p51_p0  ;;  %s121_s20 = sshll.u32 %s3102_s19, 4  ;;  %s122_s20 = int_to_ptr.vmem [resolvable:$true] %s121_s20 }
   0xa   : > { %p3167_p5 = pnand %p2264_p2, %p109_p3  ;;  %s26_s22 = sadd.s32 1, %s3096_s13 }
   0xb   : > { %s2975_s23 = scalar_lea.vmem %s122_s20, 4096  ;;  %p2983_p12 = scmp.lt.s32.totalorder %s122_s20, %s122_s20 }
   0xc   : > { %p2866_p6 = pneg %p3167_p5  ;;  %p2976_p9 = scmp.ne.s32.totalorder %s122_s20, %s2975_s23 }
   0xd   : > { %p2984_p13 = scmp.lt.s32.totalorder %s2975_s23, %s2975_s23 }
   0xe   : > { %p3175_p7 = pnand %p2866_p6, %p3155_p1 }
   0xf   : > { %p2985_p0 = por %p2984_p13, %p2983_p12 }
  0x10   : > { %p2966_p8 = pneg %p3175_p7 }
  0x12   : > { %p2978_p10 = pnand %p2976_p9, %p2966_p8 }
  0x14   : > { %p2979_p11 = pneg %p2978_p10 }
  0x16   : > { %p2986_p2 = pnand %p2985_p0, %p2979_p11 }
  0x18   : > { %2989 = shalt.err (!%p2986_p2)
}
  0x19   : > { %s3103_s24 = smov 128   ;;  %s3104_s25 = smov 8  }
  0x1a   : > { %2869 = dma.hbm_to_vmem [thread:$0]  (!%p3175_p7), %s4044_s1, 4096, %s122_s20, [#allocation7], %s3103_s24, %s3103_s24, %s3104_s25  }
  0x1b   : > { %p27_p3 = scmp.ge.s32.totalorder %s26_s22, 4  ;;  %s38_s28 = sadd.s32 1, %s3088_s11 }
  0x1c   : > { %p45_p6 = scmp.ne.s32.totalorder %s3088_s11, %s3084_s10  ;;  %p46_p8 = scmp.eq.s32.totalorder %s3100_s14, 0 }
  0x1d   : > { %s4058_s22 = smov (%p27_p3, %s26_s22), 0  ;;  %p2875_p10 = scmp.lt.s32.totalorder %s3100_s14, 4 }
  0x1e   : > { %p47_p9 = por %p46_p8, %p45_p6  ;;  %s33_s29 = ssub.s32 %s3096_s13, %s4058_s22 }
  0x1f   : > { %s135_s30 = sand.u32 1, %s3088_s11   ;;  %p36_p11 = scmp.eq.s32.totalorder %s33_s29, 0 }
  0x20   : > { %s2267_s3 = sshll.u32 %s135_s30, 7  ;;  %s2295_s4 = sshll.u32 %s3096_s13, 11 }
  0x21   : > { %s3202_s5 = scalar_select %p36_p11, %s3088_s11, %s38_s28  }
  0x22   : > { %s146_s8 = scalar_lea.hbm %s4043_s0, %s2295_s4  ;;  %s139_s9 = scalar_lea.vmem [#allocation3], %s2267_s3 }
  0x23   : > { %s147_s19 = sshll.u32 %s139_s9, 4  ;;  %p3207_p7 = pnand %p2875_p10, %p47_p9  ;;  %s148_s19 = int_to_ptr.vmem [resolvable:$true] %s147_s19 }
  0x24   : > { %s136_s21 = scalar_lea.sflag [#allocation4], %s135_s30  ;;  %s3003_s23 = scalar_lea.vmem %s148_s19, 2048 }
  0x25   : > { %p2992_p12 = pneg %p3207_p7  ;;  %p3004_p13 = scmp.ne.s32.totalorder %s148_s19, %s3003_s23 }
  0x26   : > { %s3105_s26 = smov [#allocation3]  }
  0x27   : > { %p3006_p0 = pnand %p3004_p13, %p2992_p12  ;;  %s3008_s27 = sshll.u32 %s3105_s26, 4  ;;  %s3009_s27 = int_to_ptr.vmem [resolvable:$false] %s3008_s27 }
  0x28   : > { %s3010_s28 = scalar_lea.vmem %s3009_s27, 4096  ;;  %p3011_p3 = scmp.lt.s32.totalorder %s148_s19, %s3009_s27 }
  0x29   : > { %p3007_p2 = pneg %p3006_p0  ;;  %p3012_p6 = scmp.lt.s32.totalorder %s3010_s28, %s3003_s23 }
  0x2b   : > { %p3013_p8 = por %p3012_p6, %p3011_p3 }
  0x2d   : > { %p3014_p9 = pnand %p3013_p8, %p3007_p2 }
  0x2f   : > { %3017 = shalt.err (!%p3014_p9)
}
  0x30   : > { %2873 = dma.hbm_to_vmem [thread:$0]  (!%p3207_p7), %s146_s8, 2048, %s148_s19, %s136_s21, %s3103_s24, %s3103_s24, %s3104_s25  }
  0x31   : > { %159 = sbr.rel (%p3167_p5) target bundleno = 3754 (0xeaa), region = 28  ;;  %s161_s29 = sand.u32 (!%p3167_p5), 1, %s3084_s10  }
  0x32   : > { %s2271_s30 = sshll.u32 (!%p3167_p5), %s161_s29, 7  ;;  %s162_s3 = scalar_lea.sflag (!%p3167_p5), [#allocation4], %s161_s29 }
  0x33   : > { %s3221_s4 = scalar_lea.vmem (!%p3167_p5), [#allocation3], %s2271_s30 }
  0x36   : > { %3067 = dma.done.wait (%p3163_p4), %s162_s3, 2048  }
  0x37   : > { %3069 = vsyncadd (%p3163_p4), %s162_s3, 4294965248 }
  0x38   : > { %3071 = dma.done.wait (%p3155_p1), [#allocation7], 4096  }
  0x39   : > { %3073 = vsyncadd (%p3155_p1), [#allocation7], 4294963200  ;;  %p2273_p5 = scmp.ne.s32.totalorder %s3092_s12, 0 }
  0x3b   : > { %189 = sbr.rel (%p2273_p5) target bundleno = 66 (0x42), region = 40 }
  0x40   : > { %v3106_v0 = vmov 0.0  }
  0x41   : > { %190 = vst [vmem:[#allocation2] sm:$0xff] %v3106_v0  ;;  %191 = vst [vmem:[#allocation2 + $0x8] sm:$0xff] %v3106_v0 }
  0x42 PF: > { %v3232_v1 = vld [vmem:[#allocation6 + $0xf8] sm:$0xff]  ;;  %v3236_v3 = vld [vmem:[#allocation6 + $0xf0] sm:$0xff]  ;;  %v3243_v5 = vld [vmem:[#allocation6 + $0xe8] sm:$0xff]  ;;  %s3403_s16 = sshll.u32 %s3092_s12, 4 }
  0x43   : > { %v3234_v2 = vld [vmem:[#allocation6 + $0x78] sm:$0xff]  ;;  %2296 = vmatprep.subr.mxu0 %v3232_v1  ;;  %v3239_v4 = vld [vmem:[#allocation6 + $0x70] sm:$0xff]  ;;  %2331 = vmatprep.subr.mxu1 %v3232_v1  ;;  %v3247_v6 = vld [vmem:[#allocation6 + $0x68] sm:$0xff]  ;;  %p307_p1 = scmp.lt.s32.totalorder %s3403_s16, 50  ;;  %s430_s18 = sadd.s32 1, %s3403_s16 }
  0x44   : > { %2297 = vmatpush3.msra.mxu0 %v3234_v2  ;;  %2332 = vmatpush3.msra.mxu1 %v3234_v2  ;;  %v3251_v7 = vld [vmem:[#allocation6 + $0xe0] sm:$0xff]  ;;  %v3259_v9 = vld [vmem:[#allocation6 + $0xd8] sm:$0xff]  ;;  %v3267_v11 = vld [vmem:[#allocation6 + $0xd0] sm:$0xff]  ;;  %p431_p4 = scmp.lt.s32.totalorder %s430_s18, 50  ;;  %s554_s25 = sadd.s32 2, %s3403_s16 }
  0x45   : > { %2298 = vmatprep.subr.mxu0 %v3236_v3  ;;  %2333 = vmatprep.subr.mxu1 %v3236_v3  ;;  %v3255_v8 = vld [vmem:[#allocation6 + $0x60] sm:$0xff]  ;;  %v3263_v10 = vld [vmem:[#allocation6 + $0x58] sm:$0xff]  ;;  %v3271_v12 = vld [vmem:[#allocation6 + $0x50] sm:$0xff]  ;;  %s308_s17 = scalar_select %p307_p1, 1, 0 }
  0x46   : > { %2299 = vmatpush3.msra.mxu0 %v3239_v4  ;;  %2334 = vmatpush3.msra.mxu1 %v3239_v4  ;;  %v3275_v13 = vld [vmem:[#allocation6 + $0xc8] sm:$0xff]  ;;  %v3285_v16 = vld [vmem:[#allocation6 + $0xc0] sm:$0xff]  ;;  %v3293_v18 = vld [vmem:[#allocation6 + $0xb8] sm:$0xff]  ;;  %s432_s24 = scalar_select %p431_p4, 1, 0 }
  0x47   : > { %2300 = vmatprep.subr.mxu0 %v3243_v5  ;;  %2335 = vmatprep.subr.mxu1 %v3243_v5  ;;  %v3281_v15 = vld [vmem:[#allocation6 + $0x48] sm:$0xff]  ;;  %v3289_v17 = vld [vmem:[#allocation6 + $0x40] sm:$0xff]  ;;  %v3297_v19 = vld [vmem:[#allocation6 + $0x38] sm:$0xff]  ;;  %v309_v47 = vstv %s308_s17  ;;  %p555_p10 = scmp.lt.s32.totalorder %s554_s25, 50  ;;  %s678_s7 = sadd.s32 3, %s3403_s16 }
  0x48   : > { %2301 = vmatpush3.msra.mxu0 %v3247_v6  ;;  %2336 = vmatpush3.msra.mxu1 %v3247_v6  ;;  %v3277_v14 = vld [vmem:[#allocation2 + $0x8] sm:$0xff]  ;;  %v3301_v20 = vld [vmem:[#allocation6 + $0xb0] sm:$0xff]  ;;  %v3309_v22 = vld [vmem:[#allocation6 + $0xa8] sm:$0xff]  ;;  %vm310_vm0 = vcmp.eq.s32.totalorder %v309_v47, 1  ;;  %v433_v0 = vstv %s432_s24  ;;  %p679_p11 = scmp.lt.s32.totalorder %s678_s7, 50  ;;  %s802_s9 = sadd.s32 4, %s3403_s16 }
  0x49   : > { %2302 = vmatprep.subr.mxu0 %v3251_v7  ;;  %2337 = vmatprep.subr.mxu1 %v3251_v7  ;;  %v3305_v21 = vld [vmem:[#allocation6 + $0x30] sm:$0xff]  ;;  %v3313_v23 = vld [vmem:[#allocation6 + $0x28] sm:$0xff]  ;;  %v3317_v24 = vld [vmem:[#allocation6 + $0xa0] sm:$0xff]  ;;  %v298_v40 = vmul.f32 4.9, %v3277_v14  ;;  %vm434_vm1 = vcmp.eq.s32.totalorder %v433_v0, 1 }
  0x4a   : > { %2303 = vmatpush3.msra.mxu0 %v3255_v8  ;;  %2338 = vmatpush3.msra.mxu1 %v3255_v8  ;;  %v3321_v25 = vld [vmem:[#allocation6 + $0x20] sm:$0xff]  ;;  %v3325_v26 = vld [vmem:[#allocation6 + $0x98] sm:$0xff]  ;;  %v3333_v28 = vld [vmem:[#allocation6 + $0x90] sm:$0xff]  ;;  %s556_s6 = scalar_select %p555_p10, 1, 0 }
  0x4b   : > { %2304 = vmatprep.subr.mxu0 %v3259_v9  ;;  %2339 = vmatprep.subr.mxu1 %v3259_v9  ;;  %v3329_v27 = vld [vmem:[#allocation6 + $0x18] sm:$0xff]  ;;  %v3337_v29 = vld [vmem:[#allocation6 + $0x10] sm:$0xff]  ;;  %v3341_v30 = vld [vmem:[#allocation6 + $0x88] sm:$0xff]  ;;  %s680_s8 = scalar_select %p679_p11, 1, 0 }
  0x4c   : > { %2305 = vmatpush3.msra.mxu0 %v3263_v10  ;;  %2340 = vmatpush3.msra.mxu1 %v3263_v10  ;;  %v3345_v31 = vld [vmem:[#allocation6 + $0x8] sm:$0xff]  ;;  %v3349_v32 = vld [vmem:[#allocation6 + $0x80] sm:$0xff]  ;;  %v3357_v34 = vld [vmem:[#allocation2] sm:$0xff]  ;;  %p803_p7 = scmp.lt.s32.totalorder %s802_s9, 50  ;;  %s926_s20 = sadd.s32 5, %s3403_s16 }
  0x4d   : > { %2306 = vmatprep.subr.mxu0 %v3267_v11  ;;  %291 = vmatprep.mubr.f32.mxu0 %v3277_v14  ;;  %v3353_v33 = vld [vmem:[#allocation6] sm:$0xff]  ;;  %v300_v41 = vmul.f32 4.8, %v3357_v34  ;;  %v2275_v53 = vld [vmem:[%s3221_s4 + $0x8] sm:$0xff]  ;;  %v3550_v0 = vld [vmem:[#allocation6 + $0xd8] sm:$0xff]  ;;  %p927_p12 = scmp.lt.s32.totalorder %s926_s20, 50 }
  0x4e   : > { %2307 = vmatpush3.msra.mxu0 %v3271_v12  ;;  %2341 = vmatprep.subr.mxu1 %v3267_v11  ;;  %v226_v36 = vld [vmem:[%s3221_s4] sm:$0xff]  ;;  %s804_s19 = scalar_select %p803_p7, 1, 0 }
  0x4f   : > { %2308 = vmatprep.subr.mxu0 %v3275_v13  ;;  %2342 = vmatpush3.msra.mxu1 %v3271_v12  ;;  %s928_s21 = scalar_select %p927_p12, 1, 0 }
  0x50   : > { %2309 = vmatpush3.msra.mxu0 %v3281_v15  ;;  %2343 = vmatprep.subr.mxu1 %v3275_v13  ;;  %s1050_s23 = sadd.s32 6, %s3403_s16  ;;  %s1174_s27 = sadd.s32 7, %s3403_s16 }
  0x51   : > { %2310 = vmatprep.subr.mxu0 %v3285_v16  ;;  %2344 = vmatpush3.msra.mxu1 %v3281_v15  ;;  %p1051_p13 = scmp.lt.s32.totalorder %s1050_s23, 50  ;;  %p1175_p0 = scmp.lt.s32.totalorder %s1174_s27, 50 }
  0x52   : > { %2311 = vmatpush3.msra.mxu0 %v3289_v17  ;;  %2345 = vmatprep.subr.mxu1 %v3285_v16  ;;  %s1298_s29 = sadd.s32 8, %s3403_s16  ;;  %s1422_s3 = sadd.s32 9, %s3403_s16 }
  0x53   : > { %2312 = vmatprep.subr.mxu0 %v3293_v18  ;;  %2346 = vmatpush3.msra.mxu1 %v3289_v17  ;;  %s1052_s26 = scalar_select %p1051_p13, 1, 0 }
  0x54   : > { %2313 = vmatpush3.msra.mxu0 %v3297_v19  ;;  %2347 = vmatprep.subr.mxu1 %v3293_v18  ;;  %s1176_s28 = scalar_select %p1175_p0, 1, 0 }
  0x55   : > { %2314 = vmatprep.subr.mxu0 %v3301_v20  ;;  %2348 = vmatpush3.msra.mxu1 %v3297_v19  ;;  %p1299_p2 = scmp.lt.s32.totalorder %s1298_s29, 50  ;;  %p1423_p3 = scmp.lt.s32.totalorder %s1422_s3, 50 }
  0x56   : > { %2315 = vmatpush3.msra.mxu0 %v3305_v21  ;;  %2349 = vmatprep.subr.mxu1 %v3301_v20  ;;  %s1546_s18 = sadd.s32 10, %s3403_s16  ;;  %s1670_s25 = sadd.s32 11, %s3403_s16 }
  0x57   : > { %2316 = vmatprep.subr.mxu0 %v3309_v22  ;;  %2350 = vmatpush3.msra.mxu1 %v3305_v21  ;;  %s1300_s30 = scalar_select %p1299_p2, 1, 0 }
  0x58   : > { %2317 = vmatpush3.msra.mxu0 %v3313_v23  ;;  %2351 = vmatprep.subr.mxu1 %v3309_v22  ;;  %s1424_s17 = scalar_select %p1423_p3, 1, 0 }
  0x59   : > { %2318 = vmatprep.subr.mxu0 %v3317_v24  ;;  %2352 = vmatpush3.msra.mxu1 %v3313_v23  ;;  %p1547_p6 = scmp.lt.s32.totalorder %s1546_s18, 50  ;;  %p1671_p8 = scmp.lt.s32.totalorder %s1670_s25, 50 }
  0x5a   : > { %2319 = vmatpush3.msra.mxu0 %v3321_v25  ;;  %2353 = vmatprep.subr.mxu1 %v3317_v24  ;;  %s1794_s7 = sadd.s32 12, %s3403_s16  ;;  %s1918_s9 = sadd.s32 13, %s3403_s16 }
  0x5b   : > { %2320 = vmatprep.subr.mxu0 %v3325_v26  ;;  %2354 = vmatpush3.msra.mxu1 %v3321_v25  ;;  %s1548_s24 = scalar_select %p1547_p6, 1, 0 }
  0x5c   : > { %2321 = vmatpush3.msra.mxu0 %v3329_v27  ;;  %2355 = vmatprep.subr.mxu1 %v3325_v26  ;;  %p1795_p9 = scmp.lt.s32.totalorder %s1794_s7, 50  ;;  %p1919_p5 = scmp.lt.s32.totalorder %s1918_s9, 50 }
  0x5d   : > { %2322 = vmatprep.subr.mxu0 %v3333_v28  ;;  %2356 = vmatpush3.msra.mxu1 %v3329_v27  ;;  %s2042_s20 = sadd.s32 14, %s3403_s16  ;;  %s2166_s23 = sadd.s32 15, %s3403_s16 }
  0x5e   : > { %2323 = vmatpush3.msra.mxu0 %v3337_v29  ;;  %2357 = vmatprep.subr.mxu1 %v3333_v28  ;;  %p2043_p1 = scmp.lt.s32.totalorder %s2042_s20, 50  ;;  %p2167_p4 = scmp.lt.s32.totalorder %s2166_s23, 50 }
  0x5f   : > { %2324 = vmatprep.subr.mxu0 %v3341_v30  ;;  %2358 = vmatpush3.msra.mxu1 %v3337_v29  ;;  %p2290_p10 = scmp.ne.s32.totalorder %s3092_s12, 3 }
  0x60   : > { %2325 = vmatpush3.msra.mxu0 %v3345_v31  ;;  %2359 = vmatprep.subr.mxu1 %v3341_v30 }
  0x61   : > { %2326 = vmatprep.subr.mxu0 %v3349_v32  ;;  %2360 = vmatpush3.msra.mxu1 %v3345_v31 }
  0x62   : > { %2327 = vmatpush3.msra.mxu0 %v3353_v33  ;;  %2361 = vmatprep.subr.mxu1 %v3349_v32 }
  0x63   : > { %292 = vmatmul.mubr.f32.vlgmr.msra.gmra.mxu0 %v3357_v34  ;;  %2362 = vmatpush3.msra.mxu1 %v3353_v33 }
  0x64   : > { %2366 = vmatprep.subr.mxu0 %v3232_v1  ;;  %2401 = vmatprep.subr.mxu1 %v3232_v1 }
  0x65   : > { %2367 = vmatpush3.msra.mxu0 %v3234_v2 }
  0x66   : > { %2368 = vmatprep.subr.mxu0 %v3236_v3 }
  0x67   : > { %2369 = vmatpush3.msra.mxu0 %v3239_v4 }
  0x68   : > { %2370 = vmatprep.subr.mxu0 %v3243_v5 }
  0x69   : > { %2371 = vmatpush3.msra.mxu0 %v3247_v6 }
  0x6a   : > { %2372 = vmatprep.subr.mxu0 %v3251_v7 }
  0x6b   : > { %2373 = vmatpush3.msra.mxu0 %v3255_v8 }
  0x6c   : > { %2374 = vmatprep.subr.mxu0 %v3259_v9 }
  0x6d   : > { %2375 = vmatpush3.msra.mxu0 %v3263_v10 }
  0x6e   : > { %2376 = vmatprep.subr.mxu0 %v3267_v11 }
  0x6f   : > { %2377 = vmatpush3.msra.mxu0 %v3271_v12 }
  0x70   : > { %2378 = vmatprep.subr.mxu0 %v3275_v13 }
  0x71   : > { %2379 = vmatpush3.msra.mxu0 %v3281_v15 }
  0x72   : > { %2380 = vmatprep.subr.mxu0 %v3285_v16 }
  0x73   : > { %2381 = vmatpush3.msra.mxu0 %v3289_v17 }
  0x74   : > { %2382 = vmatprep.subr.mxu0 %v3293_v18 }
  0x75   : > { %2383 = vmatpush3.msra.mxu0 %v3297_v19 }
  0x76   : > { %2384 = vmatprep.subr.mxu0 %v3301_v20 }
  0x77   : > { %2385 = vmatpush3.msra.mxu0 %v3305_v21 }
  0x78   : > { %2386 = vmatprep.subr.mxu0 %v3309_v22 }
  0x79   : > { %2387 = vmatpush3.msra.mxu0 %v3313_v23 }
  0x7a   : > { %2388 = vmatprep.subr.mxu0 %v3317_v24 }
  0x7b   : > { %2389 = vmatpush3.msra.mxu0 %v3321_v25 }
  0x7c   : > { %2390 = vmatprep.subr.mxu0 %v3325_v26 }
  0x7d   : > { %2391 = vmatpush3.msra.mxu0 %v3329_v27 }
  0x7e   : > { %2392 = vmatprep.subr.mxu0 %v3333_v28 }
  0x7f   : > { %2393 = vmatpush3.msra.mxu0 %v3337_v29 }
  0x80   : > { %2394 = vmatprep.subr.mxu0 %v3341_v30 }
  0x81   : > { %2395 = vmatpush3.msra.mxu0 %v3345_v31 }
  0x82   : > { %2396 = vmatprep.subr.mxu0 %v3349_v32 }
  0x83   : > { %2397 = vmatpush3.msra.mxu0 %v3353_v33 }
  0x84   : > { %2436 = vmatprep.subr.mxu0 %v3232_v1 }
 0x123   : > { %v2328_v35 = vpop.f32.mrf.mxu0 }
 0x125   : > { %v2329_v37 = vpop.f32.mrf.mxu0 }
 0x126   : > { %v2330_v38 = vadd.f32 %v2329_v37, %v2328_v35  ;;  %v2276_v37 = vld [vmem:[%s3221_s4 + $0x10] sm:$0xff] }
 0x128   : > { %v294_v39 = vadd.f32 %v2330_v38, %v226_v36 }
 0x12a   : > { %2932 = vtanh.f32 %v294_v39 }
 0x137   : > { %v2933_v42 = vpop.eup %2932 }
 0x138   : > { %v299_v43 = vsub.f32 %v2933_v42, %v298_v40 }
 0x13a   : > { %v301_v44 = vsub.f32 %v299_v43, %v300_v41 }
 0x13c   : > { %v302_v45 = vmul.f32 0.054, %v301_v44 }
 0x13e   : > { %v303_v46 = vadd.f32 %v302_v45, %v3357_v34 }
 0x140   : > { %v304_v48 = vmul.f32 0.054, %v303_v46  ;;  %v311_v51 = vsel %vm310_vm0, %v303_v46, %v3357_v34 }
 0x141   : > { %v424_v59 = vmul.f32 4.8, %v311_v51 }
 0x142   : > { %v305_v49 = vadd.f32 %v304_v48, %v3277_v14  ;;  %v557_v48 = vstv %s556_s6  ;;  %s1672_s6 = scalar_select %p1671_p8, 1, 0 }
 0x143   : > { %vm558_vm2 = vcmp.eq.s32.totalorder %v557_v48, 1  ;;  %v3618_v48 = vld [vmem:[#allocation6 + $0x18] sm:$0xff] }
 0x144   : > { %v312_v50 = vsel %vm310_vm0, %v305_v49, %v3277_v14 }
 0x145   : > { %415 = vmatprep.mubr.f32.mxu1 %v312_v50  ;;  %v422_v57 = vmul.f32 4.9, %v312_v50 }
 0x146   : > { %416 = vmatmul.mubr.f32.vlgmr.msra.gmra.mxu1 %v311_v51 }
 0x147   : > { %2402 = vmatpush3.msra.mxu1 %v3234_v2 }
 0x148   : > { %2403 = vmatprep.subr.mxu1 %v3236_v3 }
 0x149   : > { %2404 = vmatpush3.msra.mxu1 %v3239_v4 }
 0x14a   : > { %2405 = vmatprep.subr.mxu1 %v3243_v5 }
 0x14b   : > { %2406 = vmatpush3.msra.mxu1 %v3247_v6 }
 0x14c   : > { %2407 = vmatprep.subr.mxu1 %v3251_v7 }
 0x14d   : > { %2408 = vmatpush3.msra.mxu1 %v3255_v8 }
 0x14e   : > { %2409 = vmatprep.subr.mxu1 %v3259_v9 }
 0x14f   : > { %2410 = vmatpush3.msra.mxu1 %v3263_v10 }
 0x150   : > { %2411 = vmatprep.subr.mxu1 %v3267_v11 }
 0x151   : > { %2412 = vmatpush3.msra.mxu1 %v3271_v12 }
 0x152   : > { %2413 = vmatprep.subr.mxu1 %v3275_v13 }
 0x153   : > { %2414 = vmatpush3.msra.mxu1 %v3281_v15 }
 0x154   : > { %2415 = vmatprep.subr.mxu1 %v3285_v16 }
 0x155   : > { %2416 = vmatpush3.msra.mxu1 %v3289_v17 }
 0x156   : > { %2417 = vmatprep.subr.mxu1 %v3293_v18 }
 0x157   : > { %2418 = vmatpush3.msra.mxu1 %v3297_v19 }
 0x158   : > { %2419 = vmatprep.subr.mxu1 %v3301_v20 }
 0x159   : > { %2420 = vmatpush3.msra.mxu1 %v3305_v21 }
 0x15a   : > { %2421 = vmatprep.subr.mxu1 %v3309_v22 }
 0x15b   : > { %2422 = vmatpush3.msra.mxu1 %v3313_v23 }
 0x15c   : > { %2423 = vmatprep.subr.mxu1 %v3317_v24 }
 0x15d   : > { %2424 = vmatpush3.msra.mxu1 %v3321_v25 }
 0x15e   : > { %2425 = vmatprep.subr.mxu1 %v3325_v26 }
 0x15f   : > { %2426 = vmatpush3.msra.mxu1 %v3329_v27 }
 0x160   : > { %2427 = vmatprep.subr.mxu1 %v3333_v28 }
 0x161   : > { %2428 = vmatpush3.msra.mxu1 %v3337_v29 }
 0x162   : > { %2429 = vmatprep.subr.mxu1 %v3341_v30 }
 0x163   : > { %2430 = vmatpush3.msra.mxu1 %v3345_v31 }
 0x164   : > { %2431 = vmatprep.subr.mxu1 %v3349_v32 }
 0x165   : > { %2432 = vmatpush3.msra.mxu1 %v3353_v33 }
 0x166   : > { %2471 = vmatprep.subr.mxu1 %v3232_v1 }
 0x206   : > { %v2363_v52 = vpop.f32.mrf.mxu1 }
 0x208   : > { %v2364_v54 = vpop.f32.mrf.mxu1 }
 0x209   : > { %v2365_v55 = vadd.f32 %v2364_v54, %v2363_v52 }
 0x20b   : > { %v418_v56 = vadd.f32 %v2365_v55, %v2275_v53 }
 0x20d   : > { %2934 = vtanh.f32 %v418_v56  ;;  %v3519_v56 = vld [vmem:[#allocation6 + $0xf8] sm:$0xff] }
 0x21a   : > { %v2935_v58 = vpop.eup %2934 }
 0x21b   : > { %v423_v60 = vsub.f32 %v2935_v58, %v422_v57  ;;  %v3522_v57 = vld [vmem:[#allocation6 + $0x78] sm:$0xff]  ;;  %v3526_v58 = vld [vmem:[#allocation6 + $0xf0] sm:$0xff] }
 0x21d   : > { %v425_v61 = vsub.f32 %v423_v60, %v424_v59  ;;  %v3530_v59 = vld [vmem:[#allocation6 + $0x70] sm:$0xff]  ;;  %v3534_v60 = vld [vmem:[#allocation6 + $0xe8] sm:$0xff] }
 0x21f   : > { %v426_v62 = vmul.f32 0.054, %v425_v61  ;;  %v3538_v61 = vld [vmem:[#allocation6 + $0x68] sm:$0xff] }
 0x221   : > { %v427_v63 = vadd.f32 %v426_v62, %v311_v51  ;;  %v3542_v62 = vld [vmem:[#allocation6 + $0xe0] sm:$0xff] }
 0x223   : > { %v428_v14 = vmul.f32 0.054, %v427_v63  ;;  %v435_v35 = vsel %vm434_vm1, %v427_v63, %v311_v51  ;;  %v3546_v63 = vld [vmem:[#allocation6 + $0x60] sm:$0xff] }
 0x224   : > { %v548_v43 = vmul.f32 4.8, %v435_v35 }
 0x225   : > { %v429_v34 = vadd.f32 %v428_v14, %v312_v50  ;;  %v3554_v14 = vld [vmem:[#allocation6 + $0x58] sm:$0xff] }
 0x227   : > { %v436_v1 = vsel %vm434_vm1, %v429_v34, %v312_v50  ;;  %v3558_v34 = vld [vmem:[#allocation6 + $0xd0] sm:$0xff] }
 0x228   : > { %539 = vmatprep.mubr.f32.mxu0 %v436_v1  ;;  %v546_v41 = vmul.f32 4.9, %v436_v1 }
 0x229   : > { %540 = vmatmul.mubr.f32.vlgmr.msra.gmra.mxu0 %v435_v35 }
 0x22a   : > { %2437 = vmatpush3.msra.mxu0 %v3234_v2 }
 0x22b   : > { %2438 = vmatprep.subr.mxu0 %v3236_v3 }
 0x22c   : > { %2439 = vmatpush3.msra.mxu0 %v3239_v4 }
 0x22d   : > { %2440 = vmatprep.subr.mxu0 %v3243_v5 }
 0x22e   : > { %2441 = vmatpush3.msra.mxu0 %v3247_v6 }
 0x22f   : > { %2442 = vmatprep.subr.mxu0 %v3251_v7 }
 0x230   : > { %2443 = vmatpush3.msra.mxu0 %v3255_v8 }
 0x231   : > { %2444 = vmatprep.subr.mxu0 %v3259_v9 }
 0x232   : > { %2445 = vmatpush3.msra.mxu0 %v3263_v10 }
 0x233   : > { %2446 = vmatprep.subr.mxu0 %v3267_v11 }
 0x234   : > { %2447 = vmatpush3.msra.mxu0 %v3271_v12 }
 0x235   : > { %2448 = vmatprep.subr.mxu0 %v3275_v13 }
 0x236   : > { %2449 = vmatpush3.msra.mxu0 %v3281_v15 }
 0x237   : > { %2450 = vmatprep.subr.mxu0 %v3285_v16 }
 0x238   : > { %2451 = vmatpush3.msra.mxu0 %v3289_v17 }
 0x239   : > { %2452 = vmatprep.subr.mxu0 %v3293_v18 }
 0x23a   : > { %2453 = vmatpush3.msra.mxu0 %v3297_v19 }
 0x23b   : > { %2454 = vmatprep.subr.mxu0 %v3301_v20 }
 0x23c   : > { %2455 = vmatpush3.msra.mxu0 %v3305_v21 }
 0x23d   : > { %2456 = vmatprep.subr.mxu0 %v3309_v22 }
 0x23e   : > { %2457 = vmatpush3.msra.mxu0 %v3313_v23 }
 0x23f   : > { %2458 = vmatprep.subr.mxu0 %v3317_v24 }
 0x240   : > { %2459 = vmatpush3.msra.mxu0 %v3321_v25 }
 0x241   : > { %2460 = vmatprep.subr.mxu0 %v3325_v26 }
 0x242   : > { %2461 = vmatpush3.msra.mxu0 %v3329_v27 }
 0x243   : > { %2462 = vmatprep.subr.mxu0 %v3333_v28 }
 0x244   : > { %2463 = vmatpush3.msra.mxu0 %v3337_v29 }
 0x245   : > { %2464 = vmatprep.subr.mxu0 %v3341_v30 }
 0x246   : > { %2465 = vmatpush3.msra.mxu0 %v3345_v31 }
 0x247   : > { %2466 = vmatprep.subr.mxu0 %v3349_v32 }
 0x248   : > { %2467 = vmatpush3.msra.mxu0 %v3353_v33 }
 0x249   : > { %2506 = vmatprep.subr.mxu0 %v3519_v56 }
 0x2e9   : > { %v2398_v36 = vpop.f32.mrf.mxu0 }
 0x2eb   : > { %v2399_v38 = vpop.f32.mrf.mxu0 }
 0x2ec   : > { %v2400_v39 = vadd.f32 %v2399_v38, %v2398_v36  ;;  %v3570_v36 = vld [vmem:[#allocation6 + $0x48] sm:$0xff]  ;;  %v3578_v38 = vld [vmem:[#allocation6 + $0x40] sm:$0xff] }
 0x2ee   : > { %v542_v40 = vadd.f32 %v2400_v39, %v2276_v37  ;;  %v3574_v37 = vld [vmem:[#allocation6 + $0xc0] sm:$0xff]  ;;  %v3582_v39 = vld [vmem:[#allocation6 + $0xb8] sm:$0xff] }
 0x2f0   : > { %2936 = vtanh.f32 %v542_v40  ;;  %v3586_v40 = vld [vmem:[#allocation6 + $0x38] sm:$0xff] }
 0x2fd   : > { %v2937_v42 = vpop.eup %2936 }
 0x2fe   : > { %v547_v44 = vsub.f32 %v2937_v42, %v546_v41  ;;  %v3590_v41 = vld [vmem:[#allocation6 + $0xb0] sm:$0xff] }
 0x2ff   : > { %v3594_v42 = vld [vmem:[#allocation6 + $0x30] sm:$0xff] }
 0x300   : > { %v549_v45 = vsub.f32 %v547_v44, %v548_v43  ;;  %v3598_v43 = vld [vmem:[#allocation6 + $0xa8] sm:$0xff] }
 0x301   : > { %v3602_v44 = vld [vmem:[#allocation6 + $0x28] sm:$0xff] }
 0x302   : > { %v550_v46 = vmul.f32 0.054, %v549_v45  ;;  %v3606_v45 = vld [vmem:[#allocation6 + $0xa0] sm:$0xff] }
 0x304   : > { %v551_v47 = vadd.f32 %v550_v46, %v435_v35  ;;  %v3610_v46 = vld [vmem:[#allocation6 + $0x20] sm:$0xff] }
 0x306   : > { %v552_v49 = vmul.f32 0.054, %v551_v47  ;;  %v559_v52 = vsel %vm558_vm2, %v551_v47, %v435_v35  ;;  %v3566_v35 = vld [vmem:[#allocation6 + $0xc8] sm:$0xff]  ;;  %v3614_v47 = vld [vmem:[#allocation6 + $0x98] sm:$0xff] }
 0x308   : > { %v553_v50 = vadd.f32 %v552_v49, %v436_v1  ;;  %v3622_v49 = vld [vmem:[#allocation6 + $0x90] sm:$0xff] }
 0x30a   : > { %v560_v51 = vsel %vm558_vm2, %v553_v50, %v436_v1  ;;  %v3562_v1 = vld [vmem:[#allocation6 + $0x50] sm:$0xff] }
 0x30b   : > { %663 = vmatprep.mubr.f32.mxu1 %v560_v51  ;;  %v3626_v50 = vld [vmem:[#allocation6 + $0x10] sm:$0xff] }
 0x30c   : > { %664 = vmatmul.mubr.f32.vlgmr.msra.gmra.mxu1 %v559_v52 }
 0x30d   : > { %2472 = vmatpush3.msra.mxu1 %v3234_v2 }
 0x30e   : > { %2473 = vmatprep.subr.mxu1 %v3236_v3  ;;  %v2277_v3 = vld [vmem:[%s3221_s4 + $0x18] sm:$0xff] }
 0x30f   : > { %2474 = vmatpush3.msra.mxu1 %v3239_v4 }
 0x310   : > { %2475 = vmatprep.subr.mxu1 %v3243_v5 }
 0x311   : > { %2476 = vmatpush3.msra.mxu1 %v3247_v6 }
 0x312   : > { %2477 = vmatprep.subr.mxu1 %v3251_v7  ;;  %v670_v7 = vmul.f32 4.9, %v560_v51 }
 0x313   : > { %2478 = vmatpush3.msra.mxu1 %v3255_v8 }
 0x314   : > { %2479 = vmatprep.subr.mxu1 %v3259_v9  ;;  %v672_v9 = vmul.f32 4.8, %v559_v52 }
 0x315   : > { %2480 = vmatpush3.msra.mxu1 %v3263_v10 }
 0x316   : > { %2481 = vmatprep.subr.mxu1 %v3267_v11 }
 0x317   : > { %2482 = vmatpush3.msra.mxu1 %v3271_v12 }
 0x318   : > { %2483 = vmatprep.subr.mxu1 %v3275_v13 }
 0x319   : > { %2484 = vmatpush3.msra.mxu1 %v3281_v15  ;;  %v681_v15 = vstv %s680_s8  ;;  %s1796_s8 = scalar_select %p1795_p9, 1, 0 }
 0x31a   : > { %2485 = vmatprep.subr.mxu1 %v3285_v16  ;;  %vm682_vm3 = vcmp.eq.s32.totalorder %v681_v15, 1 }
 0x31b   : > { %2486 = vmatpush3.msra.mxu1 %v3289_v17 }
 0x31c   : > { %2487 = vmatprep.subr.mxu1 %v3293_v18 }
 0x31d   : > { %2488 = vmatpush3.msra.mxu1 %v3297_v19 }
 0x31e   : > { %2489 = vmatprep.subr.mxu1 %v3301_v20 }
 0x31f   : > { %2490 = vmatpush3.msra.mxu1 %v3305_v21  ;;  %v2278_v21 = vld [vmem:[%s3221_s4 + $0x20] sm:$0xff] }
 0x320   : > { %2491 = vmatprep.subr.mxu1 %v3309_v22 }
 0x321   : > { %2492 = vmatpush3.msra.mxu1 %v3313_v23 }
 0x322   : > { %2493 = vmatprep.subr.mxu1 %v3317_v24 }
 0x323   : > { %2494 = vmatpush3.msra.mxu1 %v3321_v25 }
 0x324   : > { %2495 = vmatprep.subr.mxu1 %v3325_v26 }
 0x325   : > { %2496 = vmatpush3.msra.mxu1 %v3329_v27 }
 0x326   : > { %2497 = vmatprep.subr.mxu1 %v3333_v28 }
 0x327   : > { %2498 = vmatpush3.msra.mxu1 %v3337_v29 }
 0x328   : > { %2499 = vmatprep.subr.mxu1 %v3341_v30 }
 0x329   : > { %2500 = vmatpush3.msra.mxu1 %v3345_v31 }
 0x32a   : > { %2501 = vmatprep.subr.mxu1 %v3349_v32  ;;  %v805_v32 = vstv %s804_s19  ;;  %s1920_s19 = scalar_select %p1919_p5, 1, 0 }
 0x32b   : > { %2502 = vmatpush3.msra.mxu1 %v3353_v33  ;;  %vm806_vm4 = vcmp.eq.s32.totalorder %v805_v32, 1 }
 0x32c   : > { %2541 = vmatprep.subr.mxu1 %v3519_v56 }
 0x3cc   : > { %v2433_v2 = vpop.f32.mrf.mxu1 }
 0x3ce   : > { %v2434_v4 = vpop.f32.mrf.mxu1 }
 0x3cf   : > { %v2435_v5 = vadd.f32 %v2434_v4, %v2433_v2  ;;  %v3638_v2 = vld [vmem:[#allocation6 + $0x80] sm:$0xff] }
 0x3d1   : > { %v666_v6 = vadd.f32 %v2435_v5, %v2277_v3  ;;  %v3642_v3 = vld [vmem:[#allocation6] sm:$0xff]  ;;  %v2279_v5 = vld [vmem:[%s3221_s4 + $0x28] sm:$0xff] }
 0x3d3   : > { %2938 = vtanh.f32 %v666_v6 }
 0x3e0   : > { %v2939_v8 = vpop.eup %2938 }
 0x3e1   : > { %v671_v10 = vsub.f32 %v2939_v8, %v670_v7 }
 0x3e3   : > { %v673_v11 = vsub.f32 %v671_v10, %v672_v9 }
 0x3e5   : > { %v674_v12 = vmul.f32 0.054, %v673_v11 }
 0x3e7   : > { %v675_v13 = vadd.f32 %v674_v12, %v559_v52 }
 0x3e9   : > { %v676_v16 = vmul.f32 0.054, %v675_v13  ;;  %v683_v19 = vsel %vm682_vm3, %v675_v13, %v559_v52  ;;  %v3634_v52 = vld [vmem:[#allocation6 + $0x8] sm:$0xff] }
 0x3ea   : > { %v796_v27 = vmul.f32 4.8, %v683_v19 }
 0x3eb   : > { %v677_v17 = vadd.f32 %v676_v16, %v560_v51 }
 0x3ed   : > { %v684_v18 = vsel %vm682_vm3, %v677_v17, %v560_v51  ;;  %v3630_v51 = vld [vmem:[#allocation6 + $0x88] sm:$0xff]  ;;  %v929_v17 = vstv %s928_s21  ;;  %s2044_s21 = scalar_select %p2043_p1, 1, 0 }
 0x3ee   : > { %787 = vmatprep.mubr.f32.mxu0 %v684_v18  ;;  %v794_v25 = vmul.f32 4.9, %v684_v18  ;;  %vm930_vm5 = vcmp.eq.s32.totalorder %v929_v17, 1 }
 0x3ef   : > { %788 = vmatmul.mubr.f32.vlgmr.msra.gmra.mxu0 %v683_v19 }
 0x3f0   : > { %2507 = vmatpush3.msra.mxu0 %v3522_v57 }
 0x3f1   : > { %2508 = vmatprep.subr.mxu0 %v3526_v58 }
 0x3f2   : > { %2509 = vmatpush3.msra.mxu0 %v3530_v59 }
 0x3f3   : > { %2510 = vmatprep.subr.mxu0 %v3534_v60 }
 0x3f4   : > { %2511 = vmatpush3.msra.mxu0 %v3538_v61 }
 0x3f5   : > { %2512 = vmatprep.subr.mxu0 %v3542_v62 }
 0x3f6   : > { %2513 = vmatpush3.msra.mxu0 %v3546_v63 }
 0x3f7   : > { %2514 = vmatprep.subr.mxu0 %v3550_v0 }
 0x3f8   : > { %2515 = vmatpush3.msra.mxu0 %v3554_v14 }
 0x3f9   : > { %2516 = vmatprep.subr.mxu0 %v3558_v34 }
 0x3fa   : > { %2517 = vmatpush3.msra.mxu0 %v3562_v1 }
 0x3fb   : > { %2518 = vmatprep.subr.mxu0 %v3566_v35 }
 0x3fc   : > { %2519 = vmatpush3.msra.mxu0 %v3570_v36 }
 0x3fd   : > { %2520 = vmatprep.subr.mxu0 %v3574_v37 }
 0x3fe   : > { %2521 = vmatpush3.msra.mxu0 %v3578_v38 }
 0x3ff   : > { %2522 = vmatprep.subr.mxu0 %v3582_v39 }
 0x400   : > { %2523 = vmatpush3.msra.mxu0 %v3586_v40 }
 0x401   : > { %2524 = vmatprep.subr.mxu0 %v3590_v41 }
 0x402   : > { %2525 = vmatpush3.msra.mxu0 %v3594_v42 }
 0x403   : > { %2526 = vmatprep.subr.mxu0 %v3598_v43 }
 0x404   : > { %2527 = vmatpush3.msra.mxu0 %v3602_v44 }
 0x405   : > { %2528 = vmatprep.subr.mxu0 %v3606_v45 }
 0x406   : > { %2529 = vmatpush3.msra.mxu0 %v3610_v46 }
 0x407   : > { %2530 = vmatprep.subr.mxu0 %v3614_v47 }
 0x408   : > { %2531 = vmatpush3.msra.mxu0 %v3618_v48 }
 0x409   : > { %2532 = vmatprep.subr.mxu0 %v3622_v49 }
 0x40a   : > { %2533 = vmatpush3.msra.mxu0 %v3626_v50 }
 0x40b   : > { %2534 = vmatprep.subr.mxu0 %v3630_v51 }
 0x40c   : > { %2535 = vmatpush3.msra.mxu0 %v3634_v52 }
 0x40d   : > { %2536 = vmatprep.subr.mxu0 %v3638_v2 }
 0x40e   : > { %2537 = vmatpush3.msra.mxu0 %v3642_v3 }
 0x40f   : > { %2576 = vmatprep.subr.mxu0 %v3519_v56 }
 0x4af   : > { %v2468_v20 = vpop.f32.mrf.mxu0 }
 0x4b1   : > { %v2469_v22 = vpop.f32.mrf.mxu0 }
 0x4b2   : > { %v2470_v23 = vadd.f32 %v2469_v22, %v2468_v20 }
 0x4b4   : > { %v790_v24 = vadd.f32 %v2470_v23, %v2278_v21  ;;  %v2280_v23 = vld [vmem:[%s3221_s4 + $0x30] sm:$0xff] }
 0x4b6   : > { %2940 = vtanh.f32 %v790_v24 }
 0x4c3   : > { %v2941_v26 = vpop.eup %2940 }
 0x4c4   : > { %v795_v28 = vsub.f32 %v2941_v26, %v794_v25 }
 0x4c6   : > { %v797_v29 = vsub.f32 %v795_v28, %v796_v27 }
 0x4c8   : > { %v798_v30 = vmul.f32 0.054, %v797_v29 }
 0x4ca   : > { %v799_v31 = vadd.f32 %v798_v30, %v683_v19 }
 0x4cc   : > { %v800_v33 = vmul.f32 0.054, %v799_v31  ;;  %v3515_v55 = vsel %vm806_vm4, %v799_v31, %v683_v19 }
 0x4cd   : > { %v920_v11 = vmul.f32 4.8, %v3515_v55 }
 0x4ce   : > { %v801_v53 = vadd.f32 %v800_v33, %v684_v18 }
 0x4d0   : > { %v3513_v54 = vsel %vm806_vm4, %v801_v53, %v684_v18  ;;  %v1053_v53 = vstv %s1052_s26  ;;  %s2168_s26 = scalar_select %p2167_p4, 1, 0 }
 0x4d1   : > { %911 = vmatprep.mubr.f32.mxu1 %v3513_v54  ;;  %v918_v9 = vmul.f32 4.9, %v3513_v54  ;;  %vm1054_vm6 = vcmp.eq.s32.totalorder %v1053_v53, 1 }
 0x4d2   : > { %912 = vmatmul.mubr.f32.vlgmr.msra.gmra.mxu1 %v3515_v55 }
 0x4d3   : > { %2542 = vmatpush3.msra.mxu1 %v3522_v57 }
 0x4d4   : > { %2543 = vmatprep.subr.mxu1 %v3526_v58 }
 0x4d5   : > { %2544 = vmatpush3.msra.mxu1 %v3530_v59 }
 0x4d6   : > { %2545 = vmatprep.subr.mxu1 %v3534_v60 }
 0x4d7   : > { %2546 = vmatpush3.msra.mxu1 %v3538_v61 }
 0x4d8   : > { %2547 = vmatprep.subr.mxu1 %v3542_v62 }
 0x4d9   : > { %2548 = vmatpush3.msra.mxu1 %v3546_v63 }
 0x4da   : > { %2549 = vmatprep.subr.mxu1 %v3550_v0 }
 0x4db   : > { %2550 = vmatpush3.msra.mxu1 %v3554_v14 }
 0x4dc   : > { %2551 = vmatprep.subr.mxu1 %v3558_v34 }
 0x4dd   : > { %2552 = vmatpush3.msra.mxu1 %v3562_v1 }
 0x4de   : > { %2553 = vmatprep.subr.mxu1 %v3566_v35 }
 0x4df   : > { %2554 = vmatpush3.msra.mxu1 %v3570_v36 }
 0x4e0   : > { %2555 = vmatprep.subr.mxu1 %v3574_v37 }
 0x4e1   : > { %2556 = vmatpush3.msra.mxu1 %v3578_v38 }
 0x4e2   : > { %2557 = vmatprep.subr.mxu1 %v3582_v39 }
 0x4e3   : > { %2558 = vmatpush3.msra.mxu1 %v3586_v40 }
 0x4e4   : > { %2559 = vmatprep.subr.mxu1 %v3590_v41 }
 0x4e5   : > { %2560 = vmatpush3.msra.mxu1 %v3594_v42 }
 0x4e6   : > { %2561 = vmatprep.subr.mxu1 %v3598_v43 }
 0x4e7   : > { %2562 = vmatpush3.msra.mxu1 %v3602_v44 }
 0x4e8   : > { %2563 = vmatprep.subr.mxu1 %v3606_v45 }
 0x4e9   : > { %2564 = vmatpush3.msra.mxu1 %v3610_v46 }
 0x4ea   : > { %2565 = vmatprep.subr.mxu1 %v3614_v47 }
 0x4eb   : > { %2566 = vmatpush3.msra.mxu1 %v3618_v48 }
 0x4ec   : > { %2567 = vmatprep.subr.mxu1 %v3622_v49 }
 0x4ed   : > { %2568 = vmatpush3.msra.mxu1 %v3626_v50 }
 0x4ee   : > { %2569 = vmatprep.subr.mxu1 %v3630_v51 }
 0x4ef   : > { %2570 = vmatpush3.msra.mxu1 %v3634_v52 }
 0x4f0   : > { %2571 = vmatprep.subr.mxu1 %v3638_v2 }
 0x4f1   : > { %2572 = vmatpush3.msra.mxu1 %v3642_v3 }
 0x4f2   : > { %2611 = vmatprep.subr.mxu1 %v3519_v56 }
 0x592   : > { %v2503_v4 = vpop.f32.mrf.mxu1 }
 0x594   : > { %v2504_v6 = vpop.f32.mrf.mxu1 }
 0x595   : > { %v2505_v7 = vadd.f32 %v2504_v6, %v2503_v4 }
 0x597   : > { %v914_v8 = vadd.f32 %v2505_v7, %v2279_v5  ;;  %v2281_v7 = vld [vmem:[%s3221_s4 + $0x38] sm:$0xff] }
 0x599   : > { %2942 = vtanh.f32 %v914_v8 }
 0x5a6   : > { %v2943_v10 = vpop.eup %2942 }
 0x5a7   : > { %v919_v12 = vsub.f32 %v2943_v10, %v918_v9 }
 0x5a9   : > { %v921_v13 = vsub.f32 %v919_v12, %v920_v11 }
 0x5ab   : > { %v922_v15 = vmul.f32 0.054, %v921_v13 }
 0x5ad   : > { %v923_v16 = vadd.f32 %v922_v15, %v3515_v55 }
 0x5af   : > { %v924_v18 = vmul.f32 0.054, %v923_v16  ;;  %v931_v21 = vsel %vm930_vm5, %v923_v16, %v3515_v55 }
 0x5b0   : > { %v1044_v29 = vmul.f32 4.8, %v931_v21 }
 0x5b1   : > { %v925_v19 = vadd.f32 %v924_v18, %v3513_v54 }
 0x5b3   : > { %v932_v20 = vsel %vm930_vm5, %v925_v19, %v3513_v54  ;;  %v1177_v19 = vstv %s1176_s28 }
 0x5b4   : > { %1035 = vmatprep.mubr.f32.mxu0 %v932_v20  ;;  %v1042_v27 = vmul.f32 4.9, %v932_v20  ;;  %vm1178_vm7 = vcmp.eq.s32.totalorder %v1177_v19, 1  ;;  %v3830_v19 = vld [vmem:[#allocation6 + $0xd8] sm:$0xff] }
 0x5b5   : > { %1036 = vmatmul.mubr.f32.vlgmr.msra.gmra.mxu0 %v931_v21 }
 0x5b6   : > { %2577 = vmatpush3.msra.mxu0 %v3522_v57 }
 0x5b7   : > { %2578 = vmatprep.subr.mxu0 %v3526_v58 }
 0x5b8   : > { %2579 = vmatpush3.msra.mxu0 %v3530_v59 }
 0x5b9   : > { %2580 = vmatprep.subr.mxu0 %v3534_v60 }
 0x5ba   : > { %2581 = vmatpush3.msra.mxu0 %v3538_v61 }
 0x5bb   : > { %2582 = vmatprep.subr.mxu0 %v3542_v62 }
 0x5bc   : > { %2583 = vmatpush3.msra.mxu0 %v3546_v63 }
 0x5bd   : > { %2584 = vmatprep.subr.mxu0 %v3550_v0 }
 0x5be   : > { %2585 = vmatpush3.msra.mxu0 %v3554_v14 }
 0x5bf   : > { %2586 = vmatprep.subr.mxu0 %v3558_v34 }
 0x5c0   : > { %2587 = vmatpush3.msra.mxu0 %v3562_v1 }
 0x5c1   : > { %2588 = vmatprep.subr.mxu0 %v3566_v35 }
 0x5c2   : > { %2589 = vmatpush3.msra.mxu0 %v3570_v36 }
 0x5c3   : > { %2590 = vmatprep.subr.mxu0 %v3574_v37 }
 0x5c4   : > { %2591 = vmatpush3.msra.mxu0 %v3578_v38 }
 0x5c5   : > { %2592 = vmatprep.subr.mxu0 %v3582_v39 }
 0x5c6   : > { %2593 = vmatpush3.msra.mxu0 %v3586_v40 }
 0x5c7   : > { %2594 = vmatprep.subr.mxu0 %v3590_v41 }
 0x5c8   : > { %2595 = vmatpush3.msra.mxu0 %v3594_v42 }
 0x5c9   : > { %2596 = vmatprep.subr.mxu0 %v3598_v43 }
 0x5ca   : > { %2597 = vmatpush3.msra.mxu0 %v3602_v44 }
 0x5cb   : > { %2598 = vmatprep.subr.mxu0 %v3606_v45 }
 0x5cc   : > { %2599 = vmatpush3.msra.mxu0 %v3610_v46 }
 0x5cd   : > { %2600 = vmatprep.subr.mxu0 %v3614_v47 }
 0x5ce   : > { %2601 = vmatpush3.msra.mxu0 %v3618_v48 }
 0x5cf   : > { %2602 = vmatprep.subr.mxu0 %v3622_v49 }
 0x5d0   : > { %2603 = vmatpush3.msra.mxu0 %v3626_v50 }
 0x5d1   : > { %2604 = vmatprep.subr.mxu0 %v3630_v51 }
 0x5d2   : > { %2605 = vmatpush3.msra.mxu0 %v3634_v52 }
 0x5d3   : > { %2606 = vmatprep.subr.mxu0 %v3638_v2 }
 0x5d4   : > { %2607 = vmatpush3.msra.mxu0 %v3642_v3 }
 0x5d5   : > { %2646 = vmatprep.subr.mxu0 %v3519_v56 }
 0x675   : > { %v2538_v22 = vpop.f32.mrf.mxu0 }
 0x677   : > { %v2539_v24 = vpop.f32.mrf.mxu0 }
 0x678   : > { %v2540_v25 = vadd.f32 %v2539_v24, %v2538_v22  ;;  %v2282_v24 = vld [vmem:[%s3221_s4 + $0x40] sm:$0xff] }
 0x67a   : > { %v1038_v26 = vadd.f32 %v2540_v25, %v2280_v23 }
 0x67c   : > { %2944 = vtanh.f32 %v1038_v26 }
 0x689   : > { %v2945_v28 = vpop.eup %2944 }
 0x68a   : > { %v1043_v30 = vsub.f32 %v2945_v28, %v1042_v27 }
 0x68c   : > { %v1045_v31 = vsub.f32 %v1043_v30, %v1044_v29 }
 0x68e   : > { %v1046_v32 = vmul.f32 0.054, %v1045_v31 }
 0x690   : > { %v1047_v33 = vadd.f32 %v1046_v32, %v931_v21 }
 0x692   : > { %v1048_v54 = vmul.f32 0.054, %v1047_v33  ;;  %v1055_v5 = vsel %vm1054_vm6, %v1047_v33, %v931_v21 }
 0x693   : > { %v1168_v13 = vmul.f32 4.8, %v1055_v5 }
 0x694   : > { %v1049_v55 = vadd.f32 %v1048_v54, %v932_v20  ;;  %v1301_v54 = vstv %s1300_s30 }
 0x695   : > { %vm1302_vm8 = vcmp.eq.s32.totalorder %v1301_v54, 1  ;;  %v3898_v54 = vld [vmem:[#allocation6 + $0x18] sm:$0xff] }
 0x696   : > { %v1056_v4 = vsel %vm1054_vm6, %v1049_v55, %v932_v20 }
 0x697   : > { %1159 = vmatprep.mubr.f32.mxu1 %v1056_v4  ;;  %v1166_v11 = vmul.f32 4.9, %v1056_v4 }
 0x698   : > { %1160 = vmatmul.mubr.f32.vlgmr.msra.gmra.mxu1 %v1055_v5 }
 0x699   : > { %2612 = vmatpush3.msra.mxu1 %v3522_v57 }
 0x69a   : > { %2613 = vmatprep.subr.mxu1 %v3526_v58 }
 0x69b   : > { %2614 = vmatpush3.msra.mxu1 %v3530_v59 }
 0x69c   : > { %2615 = vmatprep.subr.mxu1 %v3534_v60 }
 0x69d   : > { %2616 = vmatpush3.msra.mxu1 %v3538_v61 }
 0x69e   : > { %2617 = vmatprep.subr.mxu1 %v3542_v62 }
 0x69f   : > { %2618 = vmatpush3.msra.mxu1 %v3546_v63 }
 0x6a0   : > { %2619 = vmatprep.subr.mxu1 %v3550_v0 }
 0x6a1   : > { %2620 = vmatpush3.msra.mxu1 %v3554_v14 }
 0x6a2   : > { %2621 = vmatprep.subr.mxu1 %v3558_v34 }
 0x6a3   : > { %2622 = vmatpush3.msra.mxu1 %v3562_v1 }
 0x6a4   : > { %2623 = vmatprep.subr.mxu1 %v3566_v35 }
 0x6a5   : > { %2624 = vmatpush3.msra.mxu1 %v3570_v36 }
 0x6a6   : > { %2625 = vmatprep.subr.mxu1 %v3574_v37 }
 0x6a7   : > { %2626 = vmatpush3.msra.mxu1 %v3578_v38 }
 0x6a8   : > { %2627 = vmatprep.subr.mxu1 %v3582_v39 }
 0x6a9   : > { %2628 = vmatpush3.msra.mxu1 %v3586_v40 }
 0x6aa   : > { %2629 = vmatprep.subr.mxu1 %v3590_v41 }
 0x6ab   : > { %2630 = vmatpush3.msra.mxu1 %v3594_v42 }
 0x6ac   : > { %2631 = vmatprep.subr.mxu1 %v3598_v43 }
 0x6ad   : > { %2632 = vmatpush3.msra.mxu1 %v3602_v44 }
 0x6ae   : > { %2633 = vmatprep.subr.mxu1 %v3606_v45 }
 0x6af   : > { %2634 = vmatpush3.msra.mxu1 %v3610_v46 }
 0x6b0   : > { %2635 = vmatprep.subr.mxu1 %v3614_v47 }
 0x6b1   : > { %2636 = vmatpush3.msra.mxu1 %v3618_v48 }
 0x6b2   : > { %2637 = vmatprep.subr.mxu1 %v3622_v49 }
 0x6b3   : > { %2638 = vmatpush3.msra.mxu1 %v3626_v50 }
 0x6b4   : > { %2639 = vmatprep.subr.mxu1 %v3630_v51 }
 0x6b5   : > { %2640 = vmatpush3.msra.mxu1 %v3634_v52 }
 0x6b6   : > { %2641 = vmatprep.subr.mxu1 %v3638_v2 }
 0x6b7   : > { %2642 = vmatpush3.msra.mxu1 %v3642_v3 }
 0x6b8   : > { %2681 = vmatprep.subr.mxu1 %v3519_v56 }
 0x758   : > { %v2573_v6 = vpop.f32.mrf.mxu1 }
 0x75a   : > { %v2574_v8 = vpop.f32.mrf.mxu1 }
 0x75b   : > { %v2575_v9 = vadd.f32 %v2574_v8, %v2573_v6 }
 0x75d   : > { %v1162_v10 = vadd.f32 %v2575_v9, %v2281_v7 }
 0x75f   : > { %2946 = vtanh.f32 %v1162_v10  ;;  %v3799_v10 = vld [vmem:[#allocation6 + $0xf8] sm:$0xff] }
 0x76c   : > { %v2947_v12 = vpop.eup %2946 }
 0x76d   : > { %v1167_v15 = vsub.f32 %v2947_v12, %v1166_v11  ;;  %v3802_v11 = vld [vmem:[#allocation6 + $0x78] sm:$0xff]  ;;  %v3806_v12 = vld [vmem:[#allocation6 + $0xf0] sm:$0xff] }
 0x76f   : > { %v1169_v16 = vsub.f32 %v1167_v15, %v1168_v13  ;;  %v3810_v13 = vld [vmem:[#allocation6 + $0x70] sm:$0xff]  ;;  %v3814_v15 = vld [vmem:[#allocation6 + $0xe8] sm:$0xff] }
 0x771   : > { %v1170_v17 = vmul.f32 0.054, %v1169_v16  ;;  %v3818_v16 = vld [vmem:[#allocation6 + $0x68] sm:$0xff] }
 0x773   : > { %v1171_v18 = vadd.f32 %v1170_v17, %v1055_v5  ;;  %v3822_v17 = vld [vmem:[#allocation6 + $0xe0] sm:$0xff] }
 0x775   : > { %v1172_v20 = vmul.f32 0.054, %v1171_v18  ;;  %v1179_v22 = vsel %vm1178_vm7, %v1171_v18, %v1055_v5  ;;  %v3826_v18 = vld [vmem:[#allocation6 + $0x60] sm:$0xff] }
 0x776   : > { %v1292_v30 = vmul.f32 4.8, %v1179_v22 }
 0x777   : > { %v1173_v21 = vadd.f32 %v1172_v20, %v1056_v4  ;;  %v3834_v20 = vld [vmem:[#allocation6 + $0x58] sm:$0xff] }
 0x779   : > { %v1180_v56 = vsel %vm1178_vm7, %v1173_v21, %v1056_v4  ;;  %v3838_v21 = vld [vmem:[#allocation6 + $0xd0] sm:$0xff] }
 0x77a   : > { %1283 = vmatprep.mubr.f32.mxu0 %v1180_v56  ;;  %v1290_v28 = vmul.f32 4.9, %v1180_v56 }
 0x77b   : > { %1284 = vmatmul.mubr.f32.vlgmr.msra.gmra.mxu0 %v1179_v22 }
 0x77c   : > { %2647 = vmatpush3.msra.mxu0 %v3522_v57 }
 0x77d   : > { %2648 = vmatprep.subr.mxu0 %v3526_v58 }
 0x77e   : > { %2649 = vmatpush3.msra.mxu0 %v3530_v59 }
 0x77f   : > { %2650 = vmatprep.subr.mxu0 %v3534_v60 }
 0x780   : > { %2651 = vmatpush3.msra.mxu0 %v3538_v61 }
 0x781   : > { %2652 = vmatprep.subr.mxu0 %v3542_v62 }
 0x782   : > { %2653 = vmatpush3.msra.mxu0 %v3546_v63 }
 0x783   : > { %2654 = vmatprep.subr.mxu0 %v3550_v0 }
 0x784   : > { %2655 = vmatpush3.msra.mxu0 %v3554_v14 }
 0x785   : > { %2656 = vmatprep.subr.mxu0 %v3558_v34 }
 0x786   : > { %2657 = vmatpush3.msra.mxu0 %v3562_v1 }
 0x787   : > { %2658 = vmatprep.subr.mxu0 %v3566_v35 }
 0x788   : > { %2659 = vmatpush3.msra.mxu0 %v3570_v36 }
 0x789   : > { %2660 = vmatprep.subr.mxu0 %v3574_v37 }
 0x78a   : > { %2661 = vmatpush3.msra.mxu0 %v3578_v38 }
 0x78b   : > { %2662 = vmatprep.subr.mxu0 %v3582_v39 }
 0x78c   : > { %2663 = vmatpush3.msra.mxu0 %v3586_v40 }
 0x78d   : > { %2664 = vmatprep.subr.mxu0 %v3590_v41 }
 0x78e   : > { %2665 = vmatpush3.msra.mxu0 %v3594_v42 }
 0x78f   : > { %2666 = vmatprep.subr.mxu0 %v3598_v43 }
 0x790   : > { %2667 = vmatpush3.msra.mxu0 %v3602_v44 }
 0x791   : > { %2668 = vmatprep.subr.mxu0 %v3606_v45 }
 0x792   : > { %2669 = vmatpush3.msra.mxu0 %v3610_v46 }
 0x793   : > { %2670 = vmatprep.subr.mxu0 %v3614_v47 }
 0x794   : > { %2671 = vmatpush3.msra.mxu0 %v3618_v48 }
 0x795   : > { %2672 = vmatprep.subr.mxu0 %v3622_v49 }
 0x796   : > { %2673 = vmatpush3.msra.mxu0 %v3626_v50 }
 0x797   : > { %2674 = vmatprep.subr.mxu0 %v3630_v51 }
 0x798   : > { %2675 = vmatpush3.msra.mxu0 %v3634_v52 }
 0x799   : > { %2676 = vmatprep.subr.mxu0 %v3638_v2 }
 0x79a   : > { %2677 = vmatpush3.msra.mxu0 %v3642_v3 }
 0x79b   : > { %2716 = vmatprep.subr.mxu0 %v3799_v10 }
 0x83b   : > { %v2608_v23 = vpop.f32.mrf.mxu0 }
 0x83d   : > { %v2609_v25 = vpop.f32.mrf.mxu0 }
 0x83e   : > { %v2610_v26 = vadd.f32 %v2609_v25, %v2608_v23  ;;  %v3850_v23 = vld [vmem:[#allocation6 + $0x48] sm:$0xff]  ;;  %v3858_v25 = vld [vmem:[#allocation6 + $0x40] sm:$0xff] }
 0x840   : > { %v1286_v27 = vadd.f32 %v2610_v26, %v2282_v24  ;;  %v3854_v24 = vld [vmem:[#allocation6 + $0xc0] sm:$0xff]  ;;  %v3862_v26 = vld [vmem:[#allocation6 + $0xb8] sm:$0xff] }
 0x842   : > { %2948 = vtanh.f32 %v1286_v27  ;;  %v3866_v27 = vld [vmem:[#allocation6 + $0x38] sm:$0xff] }
 0x84f   : > { %v2949_v29 = vpop.eup %2948 }
 0x850   : > { %v1291_v31 = vsub.f32 %v2949_v29, %v1290_v28  ;;  %v3870_v28 = vld [vmem:[#allocation6 + $0xb0] sm:$0xff] }
 0x851   : > { %v3874_v29 = vld [vmem:[#allocation6 + $0x30] sm:$0xff] }
 0x852   : > { %v1293_v32 = vsub.f32 %v1291_v31, %v1292_v30  ;;  %v3878_v30 = vld [vmem:[#allocation6 + $0xa8] sm:$0xff] }
 0x853   : > { %v3882_v31 = vld [vmem:[#allocation6 + $0x28] sm:$0xff] }
 0x854   : > { %v1294_v33 = vmul.f32 0.054, %v1293_v32  ;;  %v3886_v32 = vld [vmem:[#allocation6 + $0xa0] sm:$0xff] }
 0x856   : > { %v1295_v53 = vadd.f32 %v1294_v33, %v1179_v22  ;;  %v3890_v33 = vld [vmem:[#allocation6 + $0x20] sm:$0xff] }
 0x858   : > { %v1296_v55 = vmul.f32 0.054, %v1295_v53  ;;  %v1303_v6 = vsel %vm1302_vm8, %v1295_v53, %v1179_v22  ;;  %v3846_v22 = vld [vmem:[#allocation6 + $0xc8] sm:$0xff]  ;;  %v3894_v53 = vld [vmem:[#allocation6 + $0x98] sm:$0xff] }
 0x85a   : > { %v1297_v4 = vadd.f32 %v1296_v55, %v1180_v56  ;;  %v3902_v55 = vld [vmem:[#allocation6 + $0x90] sm:$0xff] }
 0x85c   : > { %v1304_v5 = vsel %vm1302_vm8, %v1297_v4, %v1180_v56  ;;  %v3842_v56 = vld [vmem:[#allocation6 + $0x50] sm:$0xff] }
 0x85d   : > { %1407 = vmatprep.mubr.f32.mxu1 %v1304_v5  ;;  %v3906_v4 = vld [vmem:[#allocation6 + $0x10] sm:$0xff] }
 0x85e   : > { %1408 = vmatmul.mubr.f32.vlgmr.msra.gmra.mxu1 %v1303_v6 }
 0x85f   : > { %2682 = vmatpush3.msra.mxu1 %v3522_v57 }
 0x860   : > { %2683 = vmatprep.subr.mxu1 %v3526_v58  ;;  %v2283_v58 = vld [vmem:[%s3221_s4 + $0x48] sm:$0xff] }
 0x861   : > { %2684 = vmatpush3.msra.mxu1 %v3530_v59 }
 0x862   : > { %2685 = vmatprep.subr.mxu1 %v3534_v60 }
 0x863   : > { %2686 = vmatpush3.msra.mxu1 %v3538_v61 }
 0x864   : > { %2687 = vmatprep.subr.mxu1 %v3542_v62  ;;  %v1414_v62 = vmul.f32 4.9, %v1304_v5 }
 0x865   : > { %2688 = vmatpush3.msra.mxu1 %v3546_v63 }
 0x866   : > { %2689 = vmatprep.subr.mxu1 %v3550_v0  ;;  %v1416_v0 = vmul.f32 4.8, %v1303_v6 }
 0x867   : > { %2690 = vmatpush3.msra.mxu1 %v3554_v14 }
 0x868   : > { %2691 = vmatprep.subr.mxu1 %v3558_v34 }
 0x869   : > { %2692 = vmatpush3.msra.mxu1 %v3562_v1 }
 0x86a   : > { %2693 = vmatprep.subr.mxu1 %v3566_v35 }
 0x86b   : > { %2694 = vmatpush3.msra.mxu1 %v3570_v36  ;;  %v1425_v36 = vstv %s1424_s17 }
 0x86c   : > { %2695 = vmatprep.subr.mxu1 %v3574_v37  ;;  %vm1426_vm9 = vcmp.eq.s32.totalorder %v1425_v36, 1 }
 0x86d   : > { %2696 = vmatpush3.msra.mxu1 %v3578_v38 }
 0x86e   : > { %2697 = vmatprep.subr.mxu1 %v3582_v39 }
 0x86f   : > { %2698 = vmatpush3.msra.mxu1 %v3586_v40 }
 0x870   : > { %2699 = vmatprep.subr.mxu1 %v3590_v41 }
 0x871   : > { %2700 = vmatpush3.msra.mxu1 %v3594_v42  ;;  %v2284_v42 = vld [vmem:[%s3221_s4 + $0x50] sm:$0xff] }
 0x872   : > { %2701 = vmatprep.subr.mxu1 %v3598_v43 }
 0x873   : > { %2702 = vmatpush3.msra.mxu1 %v3602_v44 }
 0x874   : > { %2703 = vmatprep.subr.mxu1 %v3606_v45 }
 0x875   : > { %2704 = vmatpush3.msra.mxu1 %v3610_v46 }
 0x876   : > { %2705 = vmatprep.subr.mxu1 %v3614_v47 }
 0x877   : > { %2706 = vmatpush3.msra.mxu1 %v3618_v48 }
 0x878   : > { %2707 = vmatprep.subr.mxu1 %v3622_v49 }
 0x879   : > { %2708 = vmatpush3.msra.mxu1 %v3626_v50 }
 0x87a   : > { %2709 = vmatprep.subr.mxu1 %v3630_v51 }
 0x87b   : > { %2710 = vmatpush3.msra.mxu1 %v3634_v52 }
 0x87c   : > { %2711 = vmatprep.subr.mxu1 %v3638_v2  ;;  %v1549_v2 = vstv %s1548_s24 }
 0x87d   : > { %2712 = vmatpush3.msra.mxu1 %v3642_v3  ;;  %vm1550_vm10 = vcmp.eq.s32.totalorder %v1549_v2, 1 }
 0x87e   : > { %2751 = vmatprep.subr.mxu1 %v3799_v10 }
 0x91e   : > { %v2643_v57 = vpop.f32.mrf.mxu1 }
 0x920   : > { %v2644_v59 = vpop.f32.mrf.mxu1 }
 0x921   : > { %v2645_v60 = vadd.f32 %v2644_v59, %v2643_v57  ;;  %v3918_v57 = vld [vmem:[#allocation6 + $0x80] sm:$0xff] }
 0x923   : > { %v1410_v61 = vadd.f32 %v2645_v60, %v2283_v58  ;;  %v3922_v58 = vld [vmem:[#allocation6] sm:$0xff]  ;;  %v2285_v60 = vld [vmem:[%s3221_s4 + $0x58] sm:$0xff] }
 0x925   : > { %2950 = vtanh.f32 %v1410_v61 }
 0x932   : > { %v2951_v63 = vpop.eup %2950 }
 0x933   : > { %v1415_v14 = vsub.f32 %v2951_v63, %v1414_v62 }
 0x935   : > { %v1417_v34 = vsub.f32 %v1415_v14, %v1416_v0 }
 0x937   : > { %v1418_v1 = vmul.f32 0.054, %v1417_v34 }
 0x939   : > { %v1419_v35 = vadd.f32 %v1418_v1, %v1303_v6 }
 0x93b   : > { %v1420_v37 = vmul.f32 0.054, %v1419_v35  ;;  %v1427_v40 = vsel %vm1426_vm9, %v1419_v35, %v1303_v6  ;;  %v3914_v6 = vld [vmem:[#allocation6 + $0x8] sm:$0xff] }
 0x93c   : > { %v1540_v48 = vmul.f32 4.8, %v1427_v40 }
 0x93d   : > { %v1421_v38 = vadd.f32 %v1420_v37, %v1304_v5 }
 0x93f   : > { %v1428_v39 = vsel %vm1426_vm9, %v1421_v38, %v1304_v5  ;;  %v3910_v5 = vld [vmem:[#allocation6 + $0x88] sm:$0xff]  ;;  %v1673_v38 = vstv %s1672_s6 }
 0x940   : > { %1531 = vmatprep.mubr.f32.mxu0 %v1428_v39  ;;  %v1538_v46 = vmul.f32 4.9, %v1428_v39  ;;  %vm1674_vm11 = vcmp.eq.s32.totalorder %v1673_v38, 1 }
 0x941   : > { %1532 = vmatmul.mubr.f32.vlgmr.msra.gmra.mxu0 %v1427_v40 }
 0x942   : > { %2717 = vmatpush3.msra.mxu0 %v3802_v11 }
 0x943   : > { %2718 = vmatprep.subr.mxu0 %v3806_v12 }
 0x944   : > { %2719 = vmatpush3.msra.mxu0 %v3810_v13 }
 0x945   : > { %2720 = vmatprep.subr.mxu0 %v3814_v15 }
 0x946   : > { %2721 = vmatpush3.msra.mxu0 %v3818_v16 }
 0x947   : > { %2722 = vmatprep.subr.mxu0 %v3822_v17 }
 0x948   : > { %2723 = vmatpush3.msra.mxu0 %v3826_v18 }
 0x949   : > { %2724 = vmatprep.subr.mxu0 %v3830_v19 }
 0x94a   : > { %2725 = vmatpush3.msra.mxu0 %v3834_v20 }
 0x94b   : > { %2726 = vmatprep.subr.mxu0 %v3838_v21 }
 0x94c   : > { %2727 = vmatpush3.msra.mxu0 %v3842_v56 }
 0x94d   : > { %2728 = vmatprep.subr.mxu0 %v3846_v22 }
 0x94e   : > { %2729 = vmatpush3.msra.mxu0 %v3850_v23 }
 0x94f   : > { %2730 = vmatprep.subr.mxu0 %v3854_v24 }
 0x950   : > { %2731 = vmatpush3.msra.mxu0 %v3858_v25 }
 0x951   : > { %2732 = vmatprep.subr.mxu0 %v3862_v26 }
 0x952   : > { %2733 = vmatpush3.msra.mxu0 %v3866_v27 }
 0x953   : > { %2734 = vmatprep.subr.mxu0 %v3870_v28 }
 0x954   : > { %2735 = vmatpush3.msra.mxu0 %v3874_v29 }
 0x955   : > { %2736 = vmatprep.subr.mxu0 %v3878_v30 }
 0x956   : > { %2737 = vmatpush3.msra.mxu0 %v3882_v31 }
 0x957   : > { %2738 = vmatprep.subr.mxu0 %v3886_v32 }
 0x958   : > { %2739 = vmatpush3.msra.mxu0 %v3890_v33 }
 0x959   : > { %2740 = vmatprep.subr.mxu0 %v3894_v53 }
 0x95a   : > { %2741 = vmatpush3.msra.mxu0 %v3898_v54 }
 0x95b   : > { %2742 = vmatprep.subr.mxu0 %v3902_v55 }
 0x95c   : > { %2743 = vmatpush3.msra.mxu0 %v3906_v4 }
 0x95d   : > { %2744 = vmatprep.subr.mxu0 %v3910_v5 }
 0x95e   : > { %2745 = vmatpush3.msra.mxu0 %v3914_v6 }
 0x95f   : > { %2746 = vmatprep.subr.mxu0 %v3918_v57 }
 0x960   : > { %2747 = vmatpush3.msra.mxu0 %v3922_v58 }
 0x961   : > { %2786 = vmatprep.subr.mxu0 %v3799_v10 }
 0xa01   : > { %v2678_v41 = vpop.f32.mrf.mxu0 }
 0xa03   : > { %v2679_v43 = vpop.f32.mrf.mxu0 }
 0xa04   : > { %v2680_v44 = vadd.f32 %v2679_v43, %v2678_v41 }
 0xa06   : > { %v1534_v45 = vadd.f32 %v2680_v44, %v2284_v42  ;;  %v2286_v44 = vld [vmem:[%s3221_s4 + $0x60] sm:$0xff] }
 0xa08   : > { %2952 = vtanh.f32 %v1534_v45 }
 0xa15   : > { %v2953_v47 = vpop.eup %2952 }
 0xa16   : > { %v1539_v49 = vsub.f32 %v2953_v47, %v1538_v46 }
 0xa18   : > { %v1541_v50 = vsub.f32 %v1539_v49, %v1540_v48 }
 0xa1a   : > { %v1542_v51 = vmul.f32 0.054, %v1541_v50 }
 0xa1c   : > { %v1543_v52 = vadd.f32 %v1542_v51, %v1427_v40 }
 0xa1e   : > { %v1544_v3 = vmul.f32 0.054, %v1543_v52  ;;  %v3795_v9 = vsel %vm1550_vm10, %v1543_v52, %v1427_v40 }
 0xa1f   : > { %v1664_v34 = vmul.f32 4.8, %v3795_v9 }
 0xa20   : > { %v1545_v7 = vadd.f32 %v1544_v3, %v1428_v39 }
 0xa22   : > { %v3793_v8 = vsel %vm1550_vm10, %v1545_v7, %v1428_v39  ;;  %v1797_v7 = vstv %s1796_s8 }
 0xa23   : > { %1655 = vmatprep.mubr.f32.mxu1 %v3793_v8  ;;  %v1662_v0 = vmul.f32 4.9, %v3793_v8  ;;  %vm1798_vm12 = vcmp.eq.s32.totalorder %v1797_v7, 1 }
 0xa24   : > { %1656 = vmatmul.mubr.f32.vlgmr.msra.gmra.mxu1 %v3795_v9 }
 0xa25   : > { %2752 = vmatpush3.msra.mxu1 %v3802_v11 }
 0xa26   : > { %2753 = vmatprep.subr.mxu1 %v3806_v12 }
 0xa27   : > { %2754 = vmatpush3.msra.mxu1 %v3810_v13 }
 0xa28   : > { %2755 = vmatprep.subr.mxu1 %v3814_v15 }
 0xa29   : > { %2756 = vmatpush3.msra.mxu1 %v3818_v16 }
 0xa2a   : > { %2757 = vmatprep.subr.mxu1 %v3822_v17 }
 0xa2b   : > { %2758 = vmatpush3.msra.mxu1 %v3826_v18 }
 0xa2c   : > { %2759 = vmatprep.subr.mxu1 %v3830_v19 }
 0xa2d   : > { %2760 = vmatpush3.msra.mxu1 %v3834_v20 }
 0xa2e   : > { %2761 = vmatprep.subr.mxu1 %v3838_v21 }
 0xa2f   : > { %2762 = vmatpush3.msra.mxu1 %v3842_v56 }
 0xa30   : > { %2763 = vmatprep.subr.mxu1 %v3846_v22 }
 0xa31   : > { %2764 = vmatpush3.msra.mxu1 %v3850_v23 }
 0xa32   : > { %2765 = vmatprep.subr.mxu1 %v3854_v24 }
 0xa33   : > { %2766 = vmatpush3.msra.mxu1 %v3858_v25 }
 0xa34   : > { %2767 = vmatprep.subr.mxu1 %v3862_v26 }
 0xa35   : > { %2768 = vmatpush3.msra.mxu1 %v3866_v27 }
 0xa36   : > { %2769 = vmatprep.subr.mxu1 %v3870_v28 }
 0xa37   : > { %2770 = vmatpush3.msra.mxu1 %v3874_v29 }
 0xa38   : > { %2771 = vmatprep.subr.mxu1 %v3878_v30 }
 0xa39   : > { %2772 = vmatpush3.msra.mxu1 %v3882_v31 }
 0xa3a   : > { %2773 = vmatprep.subr.mxu1 %v3886_v32 }
 0xa3b   : > { %2774 = vmatpush3.msra.mxu1 %v3890_v33 }
 0xa3c   : > { %2775 = vmatprep.subr.mxu1 %v3894_v53 }
 0xa3d   : > { %2776 = vmatpush3.msra.mxu1 %v3898_v54 }
 0xa3e   : > { %2777 = vmatprep.subr.mxu1 %v3902_v55 }
 0xa3f   : > { %2778 = vmatpush3.msra.mxu1 %v3906_v4 }
 0xa40   : > { %2779 = vmatprep.subr.mxu1 %v3910_v5 }
 0xa41   : > { %2780 = vmatpush3.msra.mxu1 %v3914_v6 }
 0xa42   : > { %2781 = vmatprep.subr.mxu1 %v3918_v57 }
 0xa43   : > { %2782 = vmatpush3.msra.mxu1 %v3922_v58 }
 0xa44   : > { %2821 = vmatprep.subr.mxu1 %v3799_v10 }
 0xae4   : > { %v2713_v59 = vpop.f32.mrf.mxu1 }
 0xae6   : > { %v2714_v61 = vpop.f32.mrf.mxu1 }
 0xae7   : > { %v2715_v62 = vadd.f32 %v2714_v61, %v2713_v59 }
 0xae9   : > { %v1658_v63 = vadd.f32 %v2715_v62, %v2285_v60 }
 0xaeb   : > { %2954 = vtanh.f32 %v1658_v63 }
 0xaf8   : > { %v2955_v14 = vpop.eup %2954 }
 0xaf9   : > { %v1663_v1 = vsub.f32 %v2955_v14, %v1662_v0  ;;  %v2289_v0 = vld [vmem:[%s3221_s4 + $0x78] sm:$0xff] }
 0xafb   : > { %v1665_v35 = vsub.f32 %v1663_v1, %v1664_v34 }
 0xafd   : > { %v1666_v36 = vmul.f32 0.054, %v1665_v35 }
 0xaff   : > { %v1667_v37 = vadd.f32 %v1666_v36, %v3795_v9 }
 0xb01   : > { %v1668_v39 = vmul.f32 0.054, %v1667_v37  ;;  %v1675_v42 = vsel %vm1674_vm11, %v1667_v37, %v3795_v9 }
 0xb02   : > { %v1788_v50 = vmul.f32 4.8, %v1675_v42 }
 0xb03   : > { %v1669_v40 = vadd.f32 %v1668_v39, %v3793_v8 }
 0xb05   : > { %v1676_v41 = vsel %vm1674_vm11, %v1669_v40, %v3793_v8  ;;  %v2169_v40 = vstv %s2168_s26 }
 0xb06   : > { %1779 = vmatprep.mubr.f32.mxu0 %v1676_v41  ;;  %v1786_v48 = vmul.f32 4.9, %v1676_v41  ;;  %vm2170_vm15 = vcmp.eq.s32.totalorder %v2169_v40, 1 }
 0xb07   : > { %1780 = vmatmul.mubr.f32.vlgmr.msra.gmra.mxu0 %v1675_v42 }
 0xb08   : > { %2787 = vmatpush3.msra.mxu0 %v3802_v11 }
 0xb09   : > { %2788 = vmatprep.subr.mxu0 %v3806_v12 }
 0xb0a   : > { %2789 = vmatpush3.msra.mxu0 %v3810_v13 }
 0xb0b   : > { %2790 = vmatprep.subr.mxu0 %v3814_v15 }
 0xb0c   : > { %2791 = vmatpush3.msra.mxu0 %v3818_v16 }
 0xb0d   : > { %2792 = vmatprep.subr.mxu0 %v3822_v17 }
 0xb0e   : > { %2793 = vmatpush3.msra.mxu0 %v3826_v18 }
 0xb0f   : > { %2794 = vmatprep.subr.mxu0 %v3830_v19 }
 0xb10   : > { %2795 = vmatpush3.msra.mxu0 %v3834_v20 }
 0xb11   : > { %2796 = vmatprep.subr.mxu0 %v3838_v21 }
 0xb12   : > { %2797 = vmatpush3.msra.mxu0 %v3842_v56 }
 0xb13   : > { %2798 = vmatprep.subr.mxu0 %v3846_v22 }
 0xb14   : > { %2799 = vmatpush3.msra.mxu0 %v3850_v23 }
 0xb15   : > { %2800 = vmatprep.subr.mxu0 %v3854_v24 }
 0xb16   : > { %2801 = vmatpush3.msra.mxu0 %v3858_v25 }
 0xb17   : > { %2802 = vmatprep.subr.mxu0 %v3862_v26 }
 0xb18   : > { %2803 = vmatpush3.msra.mxu0 %v3866_v27 }
 0xb19   : > { %2804 = vmatprep.subr.mxu0 %v3870_v28 }
 0xb1a   : > { %2805 = vmatpush3.msra.mxu0 %v3874_v29 }
 0xb1b   : > { %2806 = vmatprep.subr.mxu0 %v3878_v30 }
 0xb1c   : > { %2807 = vmatpush3.msra.mxu0 %v3882_v31 }
 0xb1d   : > { %2808 = vmatprep.subr.mxu0 %v3886_v32 }
 0xb1e   : > { %2809 = vmatpush3.msra.mxu0 %v3890_v33 }
 0xb1f   : > { %2810 = vmatprep.subr.mxu0 %v3894_v53 }
 0xb20   : > { %2811 = vmatpush3.msra.mxu0 %v3898_v54 }
 0xb21   : > { %2812 = vmatprep.subr.mxu0 %v3902_v55 }
 0xb22   : > { %2813 = vmatpush3.msra.mxu0 %v3906_v4 }
 0xb23   : > { %2814 = vmatprep.subr.mxu0 %v3910_v5 }
 0xb24   : > { %2815 = vmatpush3.msra.mxu0 %v3914_v6 }
 0xb25   : > { %2816 = vmatprep.subr.mxu0 %v3918_v57 }
 0xb26   : > { %2817 = vmatpush3.msra.mxu0 %v3922_v58 }
 0xbc7   : > { %v2748_v43 = vpop.f32.mrf.mxu0 }
 0xbc9   : > { %v2749_v45 = vpop.f32.mrf.mxu0 }
 0xbca   : > { %v2750_v46 = vadd.f32 %v2749_v45, %v2748_v43 }
 0xbcc   : > { %v1782_v47 = vadd.f32 %v2750_v46, %v2286_v44 }
 0xbce   : > { %2956 = vtanh.f32 %v1782_v47 }
 0xbdb   : > { %v2957_v49 = vpop.eup %2956 }
 0xbdc   : > { %v1787_v51 = vsub.f32 %v2957_v49, %v1786_v48 }
 0xbde   : > { %v1789_v52 = vsub.f32 %v1787_v51, %v1788_v50 }
 0xbe0   : > { %v1790_v2 = vmul.f32 0.054, %v1789_v52 }
 0xbe2   : > { %v1791_v3 = vadd.f32 %v1790_v2, %v1675_v42 }
 0xbe4   : > { %v1792_v8 = vmul.f32 0.054, %v1791_v3  ;;  %v1799_v59 = vsel %vm1798_vm12, %v1791_v3, %v1675_v42 }
 0xbe6   : > { %v1793_v9 = vadd.f32 %v1792_v8, %v1676_v41 }
 0xbe8   : > { %v1800_v10 = vsel %vm1798_vm12, %v1793_v9, %v1676_v41 }
 0xbe9   : > { %1903 = vmatprep.mubr.f32.mxu1 %v1800_v10 }
 0xbea   : > { %1904 = vmatmul.mubr.f32.vlgmr.msra.gmra.mxu1 %v1799_v59 }
 0xbeb   : > { %2822 = vmatpush3.msra.mxu1 %v3802_v11 }
 0xbec   : > { %2823 = vmatprep.subr.mxu1 %v3806_v12  ;;  %v2287_v12 = vld [vmem:[%s3221_s4 + $0x68] sm:$0xff] }
 0xbed   : > { %2824 = vmatpush3.msra.mxu1 %v3810_v13 }
 0xbee   : > { %2825 = vmatprep.subr.mxu1 %v3814_v15 }
 0xbef   : > { %2826 = vmatpush3.msra.mxu1 %v3818_v16 }
 0xbf0   : > { %2827 = vmatprep.subr.mxu1 %v3822_v17  ;;  %v1910_v17 = vmul.f32 4.9, %v1800_v10 }
 0xbf1   : > { %2828 = vmatpush3.msra.mxu1 %v3826_v18 }
 0xbf2   : > { %2829 = vmatprep.subr.mxu1 %v3830_v19  ;;  %v1912_v19 = vmul.f32 4.8, %v1799_v59 }
 0xbf3   : > { %2830 = vmatpush3.msra.mxu1 %v3834_v20 }
 0xbf4   : > { %2831 = vmatprep.subr.mxu1 %v3838_v21 }
 0xbf5   : > { %2832 = vmatpush3.msra.mxu1 %v3842_v56 }
 0xbf6   : > { %2833 = vmatprep.subr.mxu1 %v3846_v22 }
 0xbf7   : > { %2834 = vmatpush3.msra.mxu1 %v3850_v23  ;;  %v1921_v23 = vstv %s1920_s19 }
 0xbf8   : > { %2835 = vmatprep.subr.mxu1 %v3854_v24  ;;  %vm1922_vm13 = vcmp.eq.s32.totalorder %v1921_v23, 1 }
 0xbf9   : > { %2836 = vmatpush3.msra.mxu1 %v3858_v25 }
 0xbfa   : > { %2837 = vmatprep.subr.mxu1 %v3862_v26 }
 0xbfb   : > { %2838 = vmatpush3.msra.mxu1 %v3866_v27 }
 0xbfc   : > { %2839 = vmatprep.subr.mxu1 %v3870_v28 }
 0xbfd   : > { %2840 = vmatpush3.msra.mxu1 %v3874_v29  ;;  %v2288_v29 = vld [vmem:[%s3221_s4 + $0x70] sm:$0xff] }
 0xbfe   : > { %2841 = vmatprep.subr.mxu1 %v3878_v30 }
 0xbff   : > { %2842 = vmatpush3.msra.mxu1 %v3882_v31 }
 0xc00   : > { %2843 = vmatprep.subr.mxu1 %v3886_v32 }
 0xc01   : > { %2844 = vmatpush3.msra.mxu1 %v3890_v33 }
 0xc02   : > { %2845 = vmatprep.subr.mxu1 %v3894_v53 }
 0xc03   : > { %2846 = vmatpush3.msra.mxu1 %v3898_v54 }
 0xc04   : > { %2847 = vmatprep.subr.mxu1 %v3902_v55 }
 0xc05   : > { %2848 = vmatpush3.msra.mxu1 %v3906_v4 }
 0xc06   : > { %2849 = vmatprep.subr.mxu1 %v3910_v5 }
 0xc07   : > { %2850 = vmatpush3.msra.mxu1 %v3914_v6 }
 0xc08   : > { %2851 = vmatprep.subr.mxu1 %v3918_v57  ;;  %v2045_v57 = vstv %s2044_s21 }
 0xc09   : > { %2852 = vmatpush3.msra.mxu1 %v3922_v58  ;;  %vm2046_vm14 = vcmp.eq.s32.totalorder %v2045_v57, 1 }
 0xcaa   : > { %v2783_v11 = vpop.f32.mrf.mxu1 }
 0xcac   : > { %v2784_v13 = vpop.f32.mrf.mxu1 }
 0xcad   : > { %v2785_v15 = vadd.f32 %v2784_v13, %v2783_v11 }
 0xcaf   : > { %v1906_v16 = vadd.f32 %v2785_v15, %v2287_v12 }
 0xcb1   : > { %2958 = vtanh.f32 %v1906_v16 }
 0xcbe   : > { %v2959_v18 = vpop.eup %2958 }
 0xcbf   : > { %v1911_v20 = vsub.f32 %v2959_v18, %v1910_v17 }
 0xcc1   : > { %v1913_v21 = vsub.f32 %v1911_v20, %v1912_v19 }
 0xcc3   : > { %v1914_v56 = vmul.f32 0.054, %v1913_v21 }
 0xcc5   : > { %v1915_v22 = vadd.f32 %v1914_v56, %v1799_v59 }
 0xcc7   : > { %v1916_v24 = vmul.f32 0.054, %v1915_v22  ;;  %v1923_v27 = vsel %vm1922_vm13, %v1915_v22, %v1799_v59 }
 0xcc8   : > { %v2036_v54 = vmul.f32 4.8, %v1923_v27 }
 0xcc9   : > { %v1917_v25 = vadd.f32 %v1916_v24, %v1800_v10 }
 0xccb   : > { %v1924_v26 = vsel %vm1922_vm13, %v1917_v25, %v1800_v10 }
 0xccc   : > { %2027 = vmatprep.mubr.f32.mxu0 %v1924_v26  ;;  %v2034_v33 = vmul.f32 4.9, %v1924_v26 }
 0xccd   : > { %2028 = vmatmul.mubr.f32.vlgmr.msra.gmra.mxu0 %v1923_v27 }
 0xd8d   : > { %v2818_v28 = vpop.f32.mrf.mxu0 }
 0xd8f   : > { %v2819_v30 = vpop.f32.mrf.mxu0 }
 0xd90   : > { %v2820_v31 = vadd.f32 %v2819_v30, %v2818_v28 }
 0xd92   : > { %v2030_v32 = vadd.f32 %v2820_v31, %v2288_v29 }
 0xd94   : > { %2960 = vtanh.f32 %v2030_v32 }
 0xda1   : > { %v2961_v53 = vpop.eup %2960 }
 0xda2   : > { %v2035_v55 = vsub.f32 %v2961_v53, %v2034_v33 }
 0xda4   : > { %v2037_v4 = vsub.f32 %v2035_v55, %v2036_v54 }
 0xda6   : > { %v2038_v5 = vmul.f32 0.054, %v2037_v4 }
 0xda8   : > { %v2039_v6 = vadd.f32 %v2038_v5, %v1923_v27 }
 0xdaa   : > { %v2040_v58 = vmul.f32 0.054, %v2039_v6  ;;  %v2047_v62 = vsel %vm2046_vm14, %v2039_v6, %v1923_v27 }
 0xdab   : > { %v2160_v37 = vmul.f32 4.8, %v2047_v62 }
 0xdac   : > { %v2041_v60 = vadd.f32 %v2040_v58, %v1924_v26 }
 0xdae   : > { %v2048_v61 = vsel %vm2046_vm14, %v2041_v60, %v1924_v26 }
 0xdaf   : > { %2151 = vmatprep.mubr.f32.mxu1 %v2048_v61  ;;  %v2158_v35 = vmul.f32 4.9, %v2048_v61 }
 0xdb0   : > { %2152 = vmatmul.mubr.f32.vlgmr.msra.gmra.mxu1 %v2047_v62 }
 0xe70   : > { %v2853_v63 = vpop.f32.mrf.mxu1 }
 0xe72   : > { %v2854_v14 = vpop.f32.mrf.mxu1 }
 0xe73   : > { %v2855_v34 = vadd.f32 %v2854_v14, %v2853_v63 }
 0xe75   : > { %v2154_v1 = vadd.f32 %v2855_v34, %v2289_v0 }
 0xe77   : > { %2962 = vtanh.f32 %v2154_v1 }
 0xe84   : > { %v2963_v36 = vpop.eup %2962 }
 0xe85   : > { %v2159_v38 = vsub.f32 %v2963_v36, %v2158_v35 }
 0xe87   : > { %v2161_v39 = vsub.f32 %v2159_v38, %v2160_v37 }
 0xe89   : > { %v2162_v41 = vmul.f32 0.054, %v2161_v39 }
 0xe8b   : > { %v2163_v42 = vadd.f32 %v2162_v41, %v2047_v62 }
 0xe8d   : > { %v2164_v43 = vmul.f32 0.054, %v2163_v42  ;;  %v2171_v44 = vsel %vm2170_vm15, %v2163_v42, %v2047_v62 }
 0xe8e   : > { %2173 = vst [vmem:[#allocation2] sm:$0xff] %v2171_v44  ;;  %2178 = sbr.rel (%p2290_p10) target bundleno = 3739 (0xe9b), region = 44 }
 0xe8f   : > { %v2165_v45 = vadd.f32 %v2164_v43, %v2048_v61 }
 0xe91   : > { %v2172_v46 = vsel %vm2170_vm15, %v2165_v45, %v2048_v61 }
 0xe92   : > { %2174 = vst [vmem:[#allocation2 + $0x8] sm:$0xff] %v2172_v46 }
 0xe99   : > { %v2179_v47 = vld [vmem:[#allocation2 + $0x8] sm:$0xff] }
 0xe9a   : > { %2180 = vst [vmem:[#allocation8] sm:$0xff] %v2179_v47 }
 0xe9b PF: > { %p4010_p11 = scmp.eq.s32.totalorder %s2263_s15, 3  ;;  %s3107_s16 = smov [#allocation8]  }
 0xe9c   : > { %s2190_s27 = sshll.u32 %s3107_s16, 4  ;;  %s2191_s27 = int_to_ptr.vmem [resolvable:$true] %s2190_s27 }
 0xe9d   : > { %s3018_s28 = scalar_lea.vmem %s2191_s27, 128  ;;  %p3025_p0 = scmp.lt.s32.totalorder %s2191_s27, %s2191_s27 }
 0xe9e   : > { %p3019_p7 = scmp.ne.s32.totalorder %s2191_s27, %s3018_s28  ;;  %p3026_p2 = scmp.lt.s32.totalorder %s3018_s28, %s3018_s28 }
 0xea0   : > { %p3020_p12 = pnand %p3019_p7, %p4010_p11  ;;  %p3027_p3 = por %p3026_p2, %p3025_p0 }
 0xea2   : > { %p3021_p13 = pneg %p3020_p12 }
 0xea4   : > { %p3028_p6 = pnand %p3027_p3, %p3021_p13 }
 0xea6   : > { %3031 = shalt.err (!%p3028_p6)
}
 0xea7   : > { %2863 = dma.vmem_to_hbm [thread:$0]  (%p4010_p11), %s2191_s27, 128, %s4045_s2, [#allocation5]  }
 0xea8   : > { %3075 = dma.done.wait (%p4010_p11), [#allocation5], 128  }
 0xea9   : > { %3077 = vsyncadd (%p4010_p11), [#allocation5], 4294967168 }
 0xeaa PF: > { %s17_s14 = sadd.s32 1, %s3100_s14   ;;  %s4052_s9 = smov %s3084_s10 }
 0xeab   : > { %p14_p8 = scmp.ge.s32.totalorder %s17_s14, 6   ;;  %s4053_s10 = smov %s3088_s11 }
 0xeac   : > { %s4054_s11 = smov %s3202_s5  ;;  %s4055_s12 = smov %s3096_s13 }
 0xead   : > { %s4056_s13 = smov %s4058_s22  ;;  %16 = sbr.rel (!%p14_p8) target bundleno = 6 (0x6), region = 93 }
 0xeb2   :  { %2203 = vsyncpa [#allocation4], 1 }
 0xeb3   :  { %2205 = vsyncpa [#allocation4 + $0x1], 1 }
 0xeb4   :  { %2206 = vsyncpa [#allocation7], 1 }
 0xeb5   :  { %2207 = vsyncpa [#allocation5], 1 }
 0xeb6   :  { %2209 = vsyncpa [#allocation5 + $0x1], 1 }

</bundles_post_ra>
